<compile_context>
chip_gen: v5e
topology: v5e:2x2
jax: 0.10.0
libtpu: 0.0.40
codegen_flags: <defaults>
</compile_context>

<pallas_src>
import functools

import jax
import jax.numpy as jnp
from jax.experimental import pallas as pl
from jax.experimental.pallas import tpu as pltpu

# ----------------------------- tiny BERT config -----------------------------
VOCAB = 100
TYPE_VOCAB = 2
MAX_POS = 16
HIDDEN = 32
NUM_HEADS = 2
HEAD_DIM = HIDDEN // NUM_HEADS
INTERMEDIATE = 64
NUM_LAYERS = 2
NUM_LABELS = 2
LN_EPS = 1e-12
ATT_SCALE = 1.0 / float(HEAD_DIM) ** 0.5

BATCH = 2
SEQ = 8

# ------------------------- vec-slab row layout (static) ----------------------
VEC_W = INTERMEDIATE                 # widest row (FFN bias), others zero-padded
EMB_G_ROW = 0
EMB_B_ROW = 1
LAYER_BASE = 2
# per-layer rows: 3*NH per-head qkv biases, then bo, ln1g, ln1b, bi, bf, ln2g, ln2b
OFF_BQKV = 0                         # + j*NUM_HEADS + h   (j: 0=q,1=k,2=v)
OFF_BO = 3 * NUM_HEADS
OFF_LN1G = OFF_BO + 1
OFF_LN1B = OFF_BO + 2
OFF_BI = OFF_BO + 3
OFF_BF = OFF_BO + 4
OFF_LN2G = OFF_BO + 5
OFF_LN2B = OFF_BO + 6
ROWS_PER_LAYER = 3 * NUM_HEADS + 7
POOLER_B_ROW = LAYER_BASE + NUM_LAYERS * ROWS_PER_LAYER
CLS_B_ROW = POOLER_B_ROW + 1
VEC_ROWS = CLS_B_ROW + 1


# --------------------------- in-kernel helper math ---------------------------
def _layer_norm(x, g, b):
    mu = jnp.mean(x, axis=-1, keepdims=True)
    xc = x - mu
    var = jnp.mean(xc * xc, axis=-1, keepdims=True)
    return xc * jax.lax.rsqrt(var + jnp.float32(LN_EPS)) * g + b


def _gelu(y):
    # tanh approximation of GELU.
    # TODO(synk): HuggingFace BERT's default 'gelu' is the exact erf form;
    # the tanh approximation differs by ~1e-3 at most.
    c = jnp.float32(0.7978845608028654)  # sqrt(2/pi)
    return 0.5 * y * (1.0 + jnp.tanh(c * (y + 0.044715 * y * y * y)))


# ---------------------------- fused forward kernel ---------------------------
def _bert_fused_kernel(emb_ref, mask_ref, wqkv_ref, wsq_ref, wi_ref, wf_ref,
                       vec_ref, logits_ref, *, batch, seq):
    H, Dh, NH, I = HIDDEN, HEAD_DIM, NUM_HEADS, INTERMEDIATE

    def vrow(r, width):
        # Static row view of the bias/LN slab -> (1, width), broadcast on add.
        return vec_ref[r:r + 1, 0:width]

    # Embedding LayerNorm (no residual).
    x = _layer_norm(emb_ref[...], vrow(EMB_G_ROW, H), vrow(EMB_B_ROW, H))  # [B*S, H]

    # Additive attention bias computed in-kernel from the int mask:
    # 0 where attend, -1e9 where masked.
    bias = (mask_ref[...].astype(jnp.float32) - 1.0) * 1e9                 # [B, S]
    bias3 = bias.reshape(batch, 1, seq)                                    # [B, 1, S]

    for l in range(NUM_LAYERS):
        base = LAYER_BASE + l * ROWS_PER_LAYER

        # ---- multi-head self-attention: per-head lane-aligned projections,
        #      batched over B with einsum, context assembled as a value ----
        ctx_parts = []
        for h in range(NH):
            q = jnp.dot(x, wqkv_ref[l, 0 * NH + h],
                        preferred_element_type=jnp.float32) + vrow(base + OFF_BQKV + 0 * NH + h, Dh)
            k = jnp.dot(x, wqkv_ref[l, 1 * NH + h],
                        preferred_element_type=jnp.float32) + vrow(base + OFF_BQKV + 1 * NH + h, Dh)
            v = jnp.dot(x, wqkv_ref[l, 2 * NH + h],
                        preferred_element_type=jnp.float32) + vrow(base + OFF_BQKV + 2 * NH + h, Dh)
            q3 = q.reshape(batch, seq, Dh)
            k3 = k.reshape(batch, seq, Dh)
            v3 = v.reshape(batch, seq, Dh)

            s = jnp.einsum('bqd,bkd->bqk', q3, k3,
                           preferred_element_type=jnp.float32) + bias3     # [B,S,S]
            s = s - jnp.max(s, axis=-1, keepdims=True)
            p = jnp.exp(s)
            p = p * pl.reciprocal(jnp.sum(p, axis=-1, keepdims=True), approx=True)
            ctx_h = jnp.einsum('bqk,bkd->bqd', p, v3,
                               preferred_element_type=jnp.float32)         # [B,S,Dh]
            ctx_parts.append(ctx_h.reshape(batch * seq, Dh))
        ctx = jnp.concatenate(ctx_parts, axis=-1)                          # [B*S, H]

        # ---- attention output projection + LN1 (residual fused) ----
        attn_out = jnp.dot(ctx, wsq_ref[l],
                           preferred_element_type=jnp.float32) + vrow(base + OFF_BO, H)
        x = _layer_norm(attn_out + x,
                        vrow(base + OFF_LN1G, H), vrow(base + OFF_LN1B, H))

        # ---- FFN + LN2 (residual fused) ----
        inter = _gelu(jnp.dot(x, wi_ref[l],
                              preferred_element_type=jnp.float32) + vrow(base + OFF_BI, I))
        ffn = jnp.dot(inter, wf_ref[l],
                      preferred_element_type=jnp.float32) + vrow(base + OFF_BF, H)
        x = _layer_norm(ffn + x,
                        vrow(base + OFF_LN2G, H), vrow(base + OFF_LN2B, H))

    # ---- pooler on [CLS] tokens + classifier ----
    cls_tok = jnp.concatenate(
        [x[b * seq:b * seq + 1, :] for b in range(batch)], axis=0)         # (B, H)
    pooled = jnp.tanh(jnp.dot(cls_tok, wsq_ref[NUM_LAYERS],
                              preferred_element_type=jnp.float32) + vrow(POOLER_B_ROW, H))
    # TODO(synk): nn.Dropout on pooled_output is identity in inference mode.
    logits = jnp.dot(pooled, wsq_ref[NUM_LAYERS + 1],
                     preferred_element_type=jnp.float32) + vrow(CLS_B_ROW, H)
    logits_ref[...] = logits[:, :NUM_LABELS]


# ----------------------------- parameter setup ------------------------------
def init_params(key):
    keys = iter(jax.random.split(key, 128))

    def nrm(shape):
        return (0.02 * jax.random.normal(next(keys), shape)).astype(jnp.float32)

    params = {
        "word_emb": nrm((VOCAB, HIDDEN)),
        "pos_emb": nrm((MAX_POS, HIDDEN)),
        "type_emb": nrm((TYPE_VOCAB, HIDDEN)),
        "emb_ln_g": jnp.ones((HIDDEN,), jnp.float32),
        "emb_ln_b": jnp.zeros((HIDDEN,), jnp.float32),
        "layers": [],
        "pooler_w": nrm((HIDDEN, HIDDEN)),
        "pooler_b": jnp.zeros((HIDDEN,), jnp.float32),
        "cls_w": nrm((HIDDEN, NUM_LABELS)),
        "cls_b": jnp.zeros((NUM_LABELS,), jnp.float32),
    }
    for _ in range(NUM_LAYERS):
        params["layers"].append({
            "wq": nrm((HIDDEN, HIDDEN)), "bq": jnp.zeros((HIDDEN,), jnp.float32),
            "wk": nrm((HIDDEN, HIDDEN)), "bk": jnp.zeros((HIDDEN,), jnp.float32),
            "wv": nrm((HIDDEN, HIDDEN)), "bv": jnp.zeros((HIDDEN,), jnp.float32),
            "wo": nrm((HIDDEN, HIDDEN)), "bo": jnp.zeros((HIDDEN,), jnp.float32),
            "ln1_g": jnp.ones((HIDDEN,), jnp.float32),
            "ln1_b": jnp.zeros((HIDDEN,), jnp.float32),
            "wi": nrm((HIDDEN, INTERMEDIATE)),
            "bi": jnp.zeros((INTERMEDIATE,), jnp.float32),
            "wf": nrm((INTERMEDIATE, HIDDEN)),
            "bf": jnp.zeros((HIDDEN,), jnp.float32),
            "ln2_g": jnp.ones((HIDDEN,), jnp.float32),
            "ln2_b": jnp.zeros((HIDDEN,), jnp.float32),
        })
    return params


def pack_params(params):
    """One-time (outside jit) packing of all weights into a few dense slabs.

    * w_qkv  [L, 3*NH, H, Dh] : per-head Q|K|V projection weights, with the
      1/sqrt(head_dim) attention scale folded into the Q weights/bias.
    * w_sq   [L+2, H, H]      : per-layer Wo, pooler W, zero-padded classifier W.
    * w_wi   [L, H, I], w_wf [L, I, H] : FFN weights.
    * vec    [VEC_ROWS, VEC_W]: every bias / LayerNorm vector as a zero-padded row.
    """
    L_list = params["layers"]
    scale = jnp.float32(ATT_SCALE)

    def per_head(w):  # [H, H] -> [NH, H, Dh]
        return jnp.stack(
            [w[:, h * HEAD_DIM:(h + 1) * HEAD_DIM] for h in range(NUM_HEADS)])

    w_qkv = jnp.stack([
        jnp.concatenate([per_head(l["wq"] * scale),
                         per_head(l["wk"]),
                         per_head(l["wv"])], axis=0)
        for l in L_list])                                           # [L, 3*NH, H, Dh]

    cls_w_pad = jnp.zeros((HIDDEN, HIDDEN), jnp.float32).at[:, :NUM_LABELS].set(
        params["cls_w"])
    w_sq = jnp.stack([l["wo"] for l in L_list]
                     + [params["pooler_w"], cls_w_pad])             # [L+2, H, H]

    w_wi = jnp.stack([l["wi"] for l in L_list])                     # [L, H, I]
    w_wf = jnp.stack([l["wf"] for l in L_list])                     # [L, I, H]

    def row(v):
        v = jnp.asarray(v, jnp.float32)
        return jnp.zeros((VEC_W,), jnp.float32).at[:v.shape[0]].set(v)

    rows = [row(params["emb_ln_g"]), row(params["emb_ln_b"])]
    for l in L_list:
        for b_vec in (l["bq"] * scale, l["bk"], l["bv"]):           # j = 0,1,2
            for h in range(NUM_HEADS):
                rows.append(row(b_vec[h * HEAD_DIM:(h + 1) * HEAD_DIM]))
        rows += [row(l["bo"]), row(l["ln1_g"]), row(l["ln1_b"]),
                 row(l["bi"]), row(l["bf"]), row(l["ln2_g"]), row(l["ln2_b"])]
    rows += [row(params["pooler_b"]), row(params["cls_b"])]
    vec = jnp.stack(rows)                                           # [VEC_ROWS, VEC_W]
    assert vec.shape == (VEC_ROWS, VEC_W)

    return {
        "word_emb": params["word_emb"],
        "pos_emb": params["pos_emb"],
        "type_emb": params["type_emb"],
        "w_qkv": w_qkv, "w_sq": w_sq, "w_wi": w_wi, "w_wf": w_wf, "vec": vec,
    }


# -------------------------------- forward -----------------------------------
def vanilla_bert_forward(packed, input_ids, token_type_ids, attention_mask):
    B, S = input_ids.shape

    # Embedding gathers (glue, plain JAX).
    pos_ids = jnp.arange(S)
    emb = (packed["word_emb"][input_ids]
           + packed["pos_emb"][pos_ids][None, :, :]
           + packed["type_emb"][token_type_ids])
    emb = emb.reshape(B * S, HIDDEN).astype(jnp.float32)

    kernel = functools.partial(_bert_fused_kernel, batch=B, seq=S)
    # Single fused, gridless pallas_call: 7 whole-array VMEM-resident operands
    # (~50 KiB total), no scratch, tiny [B, num_labels] output.
    logits = pl.pallas_call(
        kernel,
        out_shape=jax.ShapeDtypeStruct((B, NUM_LABELS), jnp.float32),
    )(emb, attention_mask.astype(jnp.int32),
      packed["w_qkv"], packed["w_sq"], packed["w_wi"], packed["w_wf"],
      packed["vec"])
    return logits


# ---------------------------------- main -------------------------------------
if __name__ == "__main__":
    key = jax.random.PRNGKey(0)
    pkey, ikey = jax.random.split(key)
    params = init_params(pkey)
    packed = pack_params(params)          # one-time packing, OUTSIDE jit
    packed = jax.block_until_ready(packed)

    input_ids = jax.random.randint(ikey, (BATCH, SEQ), 0, VOCAB, dtype=jnp.int32)
    token_type_ids = jnp.zeros((BATCH, SEQ), dtype=jnp.int32)
    attention_mask = jnp.ones((BATCH, SEQ), dtype=jnp.int32)

    fwd = jax.jit(vanilla_bert_forward)
    logits = fwd(packed, input_ids, token_type_ids, attention_mask)
    logits = jax.block_until_ready(logits)
    assert logits.shape == (BATCH, NUM_LABELS)
    print("KERNEL_OK")
</pallas_src>

<mosaic_0001>
module attributes {stable_mosaic.version = 11 : i64} {
  func.func @_bert_fused_kernel(%arg0: memref<16x32xf32, #tpu.memory_space<vmem>>, %arg1: memref<2x8xi32, #tpu.memory_space<vmem>>, %arg2: memref<2x6x32x16xf32, #tpu.memory_space<vmem>>, %arg3: memref<4x32x32xf32, #tpu.memory_space<vmem>>, %arg4: memref<2x32x64xf32, #tpu.memory_space<vmem>>, %arg5: memref<2x64x32xf32, #tpu.memory_space<vmem>>, %arg6: memref<30x64xf32, #tpu.memory_space<vmem>>, %arg7: memref<2x2xf32, #tpu.memory_space<vmem>>) attributes {dimension_semantics = [], scalar_prefetch = 0 : i64, scratch_operands = 0 : i64, tpu.core_type = #tpu.core_type<tc>} {
    %c0 = arith.constant 0 : index
    %c0_0 = arith.constant 0 : index
    %0 = vector.load %arg0[%c0, %c0_0] : memref<16x32xf32, #tpu.memory_space<vmem>>, vector<16x32xf32>
    %c0_1 = arith.constant 0 : index
    %c0_2 = arith.constant 0 : index
    %1 = vector.load %arg6[%c0_1, %c0_2] : memref<30x64xf32, #tpu.memory_space<vmem>>, vector<1x32xf32>
    %c1 = arith.constant 1 : index
    %c0_3 = arith.constant 0 : index
    %2 = vector.load %arg6[%c1, %c0_3] : memref<30x64xf32, #tpu.memory_space<vmem>>, vector<1x32xf32>
    %cst = arith.constant dense<0.000000e+00> : vector<16xf32>
    %3 = vector.multi_reduction <add>, %0, %cst [1] : vector<16x32xf32> to vector<16xf32>
    %4 = vector.shape_cast %3 : vector<16xf32> to vector<16x1xf32>
    %cst_4 = arith.constant 3.200000e+01 : f32
    %5 = vector.broadcast %cst_4 : f32 to vector<16x1xf32>
    %6 = arith.divf %4, %5 : vector<16x1xf32>
    %7 = vector.broadcast %6 : vector<16x1xf32> to vector<16x32xf32>
    %8 = arith.subf %0, %7 : vector<16x32xf32>
    %9 = arith.mulf %8, %8 : vector<16x32xf32>
    %cst_5 = arith.constant dense<0.000000e+00> : vector<16xf32>
    %10 = vector.multi_reduction <add>, %9, %cst_5 [1] : vector<16x32xf32> to vector<16xf32>
    %11 = vector.shape_cast %10 : vector<16xf32> to vector<16x1xf32>
    %cst_6 = arith.constant 3.200000e+01 : f32
    %12 = vector.broadcast %cst_6 : f32 to vector<16x1xf32>
    %13 = arith.divf %11, %12 : vector<16x1xf32>
    %cst_7 = arith.constant 9.99999996E-13 : f32
    %14 = vector.broadcast %cst_7 : f32 to vector<16x1xf32>
    %15 = arith.addf %13, %14 : vector<16x1xf32>
    %16 = math.rsqrt %15 : vector<16x1xf32>
    %17 = vector.broadcast %16 : vector<16x1xf32> to vector<16x32xf32>
    %18 = arith.mulf %8, %17 : vector<16x32xf32>
    %19 = vector.broadcast %1 : vector<1x32xf32> to vector<16x32xf32>
    %20 = arith.mulf %18, %19 : vector<16x32xf32>
    %21 = vector.broadcast %2 : vector<1x32xf32> to vector<16x32xf32>
    %22 = arith.addf %20, %21 : vector<16x32xf32>
    %c0_8 = arith.constant 0 : index
    %c0_9 = arith.constant 0 : index
    %23 = vector.load %arg1[%c0_8, %c0_9] : memref<2x8xi32, #tpu.memory_space<vmem>>, vector<2x8xi32>
    %24 = arith.sitofp %23 : vector<2x8xi32> to vector<2x8xf32>
    %cst_10 = arith.constant 1.000000e+00 : f32
    %25 = vector.broadcast %cst_10 : f32 to vector<2x8xf32>
    %26 = arith.subf %24, %25 : vector<2x8xf32>
    %cst_11 = arith.constant 1.000000e+09 : f32
    %27 = vector.broadcast %cst_11 : f32 to vector<2x8xf32>
    %28 = arith.mulf %26, %27 : vector<2x8xf32>
    %29 = vector.shape_cast %28 : vector<2x8xf32> to vector<2x1x8xf32>
    %c0_12 = arith.constant 0 : index
    %c0_13 = arith.constant 0 : index
    %c0_14 = arith.constant 0 : index
    %c0_15 = arith.constant 0 : index
    %30 = vector.load %arg2[%c0_12, %c0_13, %c0_14, %c0_15] : memref<2x6x32x16xf32, #tpu.memory_space<vmem>>, vector<1x1x32x16xf32>
    %31 = vector.shape_cast %30 : vector<1x1x32x16xf32> to vector<32x16xf32>
    %cst_16 = arith.constant dense<0.000000e+00> : vector<16x16xf32>
    %32 = tpu.matmul %22, %31, %cst_16 {dimension_numbers = #tpu.dot_dimension_numbers<[1], [0], [0], [1], [0, 0, 1, 1], [], []>} : vector<16x32xf32>, vector<32x16xf32>, vector<16x16xf32> -> vector<16x16xf32>
    %c2 = arith.constant 2 : index
    %c0_17 = arith.constant 0 : index
    %33 = vector.load %arg6[%c2, %c0_17] : memref<30x64xf32, #tpu.memory_space<vmem>>, vector<1x16xf32>
    %34 = vector.broadcast %33 : vector<1x16xf32> to vector<16x16xf32>
    %35 = arith.addf %32, %34 : vector<16x16xf32>
    %c0_18 = arith.constant 0 : index
    %c2_19 = arith.constant 2 : index
    %c0_20 = arith.constant 0 : index
    %c0_21 = arith.constant 0 : index
    %36 = vector.load %arg2[%c0_18, %c2_19, %c0_20, %c0_21] : memref<2x6x32x16xf32, #tpu.memory_space<vmem>>, vector<1x1x32x16xf32>
    %37 = vector.shape_cast %36 : vector<1x1x32x16xf32> to vector<32x16xf32>
    %cst_22 = arith.constant dense<0.000000e+00> : vector<16x16xf32>
    %38 = tpu.matmul %22, %37, %cst_22 {dimension_numbers = #tpu.dot_dimension_numbers<[1], [0], [0], [1], [0, 0, 1, 1], [], []>} : vector<16x32xf32>, vector<32x16xf32>, vector<16x16xf32> -> vector<16x16xf32>
    %c4 = arith.constant 4 : index
    %c0_23 = arith.constant 0 : index
    %39 = vector.load %arg6[%c4, %c0_23] : memref<30x64xf32, #tpu.memory_space<vmem>>, vector<1x16xf32>
    %40 = vector.broadcast %39 : vector<1x16xf32> to vector<16x16xf32>
    %41 = arith.addf %38, %40 : vector<16x16xf32>
    %c0_24 = arith.constant 0 : index
    %c4_25 = arith.constant 4 : index
    %c0_26 = arith.constant 0 : index
    %c0_27 = arith.constant 0 : index
    %42 = vector.load %arg2[%c0_24, %c4_25, %c0_26, %c0_27] : memref<2x6x32x16xf32, #tpu.memory_space<vmem>>, vector<1x1x32x16xf32>
    %43 = vector.shape_cast %42 : vector<1x1x32x16xf32> to vector<32x16xf32>
    %cst_28 = arith.constant dense<0.000000e+00> : vector<16x16xf32>
    %44 = tpu.matmul %22, %43, %cst_28 {dimension_numbers = #tpu.dot_dimension_numbers<[1], [0], [0], [1], [0, 0, 1, 1], [], []>} : vector<16x32xf32>, vector<32x16xf32>, vector<16x16xf32> -> vector<16x16xf32>
    %c6 = arith.constant 6 : index
    %c0_29 = arith.constant 0 : index
    %45 = vector.load %arg6[%c6, %c0_29] : memref<30x64xf32, #tpu.memory_space<vmem>>, vector<1x16xf32>
    %46 = vector.broadcast %45 : vector<1x16xf32> to vector<16x16xf32>
    %47 = arith.addf %44, %46 : vector<16x16xf32>
    %48 = vector.shape_cast %35 : vector<16x16xf32> to vector<2x8x16xf32>
    %49 = vector.shape_cast %41 : vector<16x16xf32> to vector<2x8x16xf32>
    %50 = vector.shape_cast %47 : vector<16x16xf32> to vector<2x8x16xf32>
    "tpu.trace_start"() <{level = 10 : i32, message = "bqd,bkd->bqk"}> : () -> ()
    %cst_30 = arith.constant dense<0.000000e+00> : vector<2x8x8xf32>
    %51 = tpu.matmul %48, %49, %cst_30 {dimension_numbers = #tpu.dot_dimension_numbers<[2], [2], [1], [1], [0, 0, 0, 1, 1, 1], [0], [0]>} : vector<2x8x16xf32>, vector<2x8x16xf32>, vector<2x8x8xf32> -> vector<2x8x8xf32>
    "tpu.trace_stop"() : () -> ()
    %52 = vector.broadcast %29 : vector<2x1x8xf32> to vector<2x8x8xf32>
    %53 = arith.addf %51, %52 : vector<2x8x8xf32>
    %cst_31 = arith.constant dense<0xFF800000> : vector<2x8xf32>
    %54 = vector.multi_reduction <maximumf>, %53, %cst_31 [2] : vector<2x8x8xf32> to vector<2x8xf32>
    %55 = vector.shape_cast %54 : vector<2x8xf32> to vector<2x8x1xf32>
    %56 = vector.broadcast %55 : vector<2x8x1xf32> to vector<2x8x8xf32>
    %57 = arith.subf %53, %56 : vector<2x8x8xf32>
    %58 = math.exp %57 : vector<2x8x8xf32>
    %cst_32 = arith.constant dense<0.000000e+00> : vector<2x8xf32>
    %59 = vector.multi_reduction <add>, %58, %cst_32 [2] : vector<2x8x8xf32> to vector<2x8xf32>
    %60 = vector.shape_cast %59 : vector<2x8xf32> to vector<2x8x1xf32>
    %61 = tpu.reciprocal %60 {approx = true} : vector<2x8x1xf32> -> vector<2x8x1xf32>
    %62 = vector.broadcast %61 : vector<2x8x1xf32> to vector<2x8x8xf32>
    %63 = arith.mulf %58, %62 : vector<2x8x8xf32>
    "tpu.trace_start"() <{level = 10 : i32, message = "bqk,bkd->bqd"}> : () -> ()
    %cst_33 = arith.constant dense<0.000000e+00> : vector<2x8x16xf32>
    %64 = tpu.matmul %63, %50, %cst_33 {dimension_numbers = #tpu.dot_dimension_numbers<[2], [1], [1], [2], [0, 0, 0, 1, 1, 2], [0], [0]>} : vector<2x8x8xf32>, vector<2x8x16xf32>, vector<2x8x16xf32> -> vector<2x8x16xf32>
    "tpu.trace_stop"() : () -> ()
    %65 = vector.shape_cast %64 : vector<2x8x16xf32> to vector<16x16xf32>
    %c0_34 = arith.constant 0 : index
    %c1_35 = arith.constant 1 : index
    %c0_36 = arith.constant 0 : index
    %c0_37 = arith.constant 0 : index
    %66 = vector.load %arg2[%c0_34, %c1_35, %c0_36, %c0_37] : memref<2x6x32x16xf32, #tpu.memory_space<vmem>>, vector<1x1x32x16xf32>
    %67 = vector.shape_cast %66 : vector<1x1x32x16xf32> to vector<32x16xf32>
    %cst_38 = arith.constant dense<0.000000e+00> : vector<16x16xf32>
    %68 = tpu.matmul %22, %67, %cst_38 {dimension_numbers = #tpu.dot_dimension_numbers<[1], [0], [0], [1], [0, 0, 1, 1], [], []>} : vector<16x32xf32>, vector<32x16xf32>, vector<16x16xf32> -> vector<16x16xf32>
    %c3 = arith.constant 3 : index
    %c0_39 = arith.constant 0 : index
    %69 = vector.load %arg6[%c3, %c0_39] : memref<30x64xf32, #tpu.memory_space<vmem>>, vector<1x16xf32>
    %70 = vector.broadcast %69 : vector<1x16xf32> to vector<16x16xf32>
    %71 = arith.addf %68, %70 : vector<16x16xf32>
    %c0_40 = arith.constant 0 : index
    %c3_41 = arith.constant 3 : index
    %c0_42 = arith.constant 0 : index
    %c0_43 = arith.constant 0 : index
    %72 = vector.load %arg2[%c0_40, %c3_41, %c0_42, %c0_43] : memref<2x6x32x16xf32, #tpu.memory_space<vmem>>, vector<1x1x32x16xf32>
    %73 = vector.shape_cast %72 : vector<1x1x32x16xf32> to vector<32x16xf32>
    %cst_44 = arith.constant dense<0.000000e+00> : vector<16x16xf32>
    %74 = tpu.matmul %22, %73, %cst_44 {dimension_numbers = #tpu.dot_dimension_numbers<[1], [0], [0], [1], [0, 0, 1, 1], [], []>} : vector<16x32xf32>, vector<32x16xf32>, vector<16x16xf32> -> vector<16x16xf32>
    %c5 = arith.constant 5 : index
    %c0_45 = arith.constant 0 : index
    %75 = vector.load %arg6[%c5, %c0_45] : memref<30x64xf32, #tpu.memory_space<vmem>>, vector<1x16xf32>
    %76 = vector.broadcast %75 : vector<1x16xf32> to vector<16x16xf32>
    %77 = arith.addf %74, %76 : vector<16x16xf32>
    %c0_46 = arith.constant 0 : index
    %c5_47 = arith.constant 5 : index
    %c0_48 = arith.constant 0 : index
    %c0_49 = arith.constant 0 : index
    %78 = vector.load %arg2[%c0_46, %c5_47, %c0_48, %c0_49] : memref<2x6x32x16xf32, #tpu.memory_space<vmem>>, vector<1x1x32x16xf32>
    %79 = vector.shape_cast %78 : vector<1x1x32x16xf32> to vector<32x16xf32>
    %cst_50 = arith.constant dense<0.000000e+00> : vector<16x16xf32>
    %80 = tpu.matmul %22, %79, %cst_50 {dimension_numbers = #tpu.dot_dimension_numbers<[1], [0], [0], [1], [0, 0, 1, 1], [], []>} : vector<16x32xf32>, vector<32x16xf32>, vector<16x16xf32> -> vector<16x16xf32>
    %c7 = arith.constant 7 : index
    %c0_51 = arith.constant 0 : index
    %81 = vector.load %arg6[%c7, %c0_51] : memref<30x64xf32, #tpu.memory_space<vmem>>, vector<1x16xf32>
    %82 = vector.broadcast %81 : vector<1x16xf32> to vector<16x16xf32>
    %83 = arith.addf %80, %82 : vector<16x16xf32>
    %84 = vector.shape_cast %71 : vector<16x16xf32> to vector<2x8x16xf32>
    %85 = vector.shape_cast %77 : vector<16x16xf32> to vector<2x8x16xf32>
    %86 = vector.shape_cast %83 : vector<16x16xf32> to vector<2x8x16xf32>
    "tpu.trace_start"() <{level = 10 : i32, message = "bqd,bkd->bqk"}> : () -> ()
    %cst_52 = arith.constant dense<0.000000e+00> : vector<2x8x8xf32>
    %87 = tpu.matmul %84, %85, %cst_52 {dimension_numbers = #tpu.dot_dimension_numbers<[2], [2], [1], [1], [0, 0, 0, 1, 1, 1], [0], [0]>} : vector<2x8x16xf32>, vector<2x8x16xf32>, vector<2x8x8xf32> -> vector<2x8x8xf32>
    "tpu.trace_stop"() : () -> ()
    %88 = vector.broadcast %29 : vector<2x1x8xf32> to vector<2x8x8xf32>
    %89 = arith.addf %87, %88 : vector<2x8x8xf32>
    %cst_53 = arith.constant dense<0xFF800000> : vector<2x8xf32>
    %90 = vector.multi_reduction <maximumf>, %89, %cst_53 [2] : vector<2x8x8xf32> to vector<2x8xf32>
    %91 = vector.shape_cast %90 : vector<2x8xf32> to vector<2x8x1xf32>
    %92 = vector.broadcast %91 : vector<2x8x1xf32> to vector<2x8x8xf32>
    %93 = arith.subf %89, %92 : vector<2x8x8xf32>
    %94 = math.exp %93 : vector<2x8x8xf32>
    %cst_54 = arith.constant dense<0.000000e+00> : vector<2x8xf32>
    %95 = vector.multi_reduction <add>, %94, %cst_54 [2] : vector<2x8x8xf32> to vector<2x8xf32>
    %96 = vector.shape_cast %95 : vector<2x8xf32> to vector<2x8x1xf32>
    %97 = tpu.reciprocal %96 {approx = true} : vector<2x8x1xf32> -> vector<2x8x1xf32>
    %98 = vector.broadcast %97 : vector<2x8x1xf32> to vector<2x8x8xf32>
    %99 = arith.mulf %94, %98 : vector<2x8x8xf32>
    "tpu.trace_start"() <{level = 10 : i32, message = "bqk,bkd->bqd"}> : () -> ()
    %cst_55 = arith.constant dense<0.000000e+00> : vector<2x8x16xf32>
    %100 = tpu.matmul %99, %86, %cst_55 {dimension_numbers = #tpu.dot_dimension_numbers<[2], [1], [1], [2], [0, 0, 0, 1, 1, 2], [0], [0]>} : vector<2x8x8xf32>, vector<2x8x16xf32>, vector<2x8x16xf32> -> vector<2x8x16xf32>
    "tpu.trace_stop"() : () -> ()
    %101 = vector.shape_cast %100 : vector<2x8x16xf32> to vector<16x16xf32>
    %102 = tpu.concatenate %65, %101 in 1 : vector<16x16xf32>, vector<16x16xf32> -> vector<16x32xf32>
    %c0_56 = arith.constant 0 : index
    %c0_57 = arith.constant 0 : index
    %c0_58 = arith.constant 0 : index
    %103 = vector.load %arg3[%c0_56, %c0_57, %c0_58] : memref<4x32x32xf32, #tpu.memory_space<vmem>>, vector<1x32x32xf32>
    %104 = vector.shape_cast %103 : vector<1x32x32xf32> to vector<32x32xf32>
    %cst_59 = arith.constant dense<0.000000e+00> : vector<16x32xf32>
    %105 = tpu.matmul %102, %104, %cst_59 {dimension_numbers = #tpu.dot_dimension_numbers<[1], [0], [0], [1], [0, 0, 1, 1], [], []>} : vector<16x32xf32>, vector<32x32xf32>, vector<16x32xf32> -> vector<16x32xf32>
    %c8 = arith.constant 8 : index
    %c0_60 = arith.constant 0 : index
    %106 = vector.load %arg6[%c8, %c0_60] : memref<30x64xf32, #tpu.memory_space<vmem>>, vector<1x32xf32>
    %107 = vector.broadcast %106 : vector<1x32xf32> to vector<16x32xf32>
    %108 = arith.addf %105, %107 : vector<16x32xf32>
    %109 = arith.addf %108, %22 : vector<16x32xf32>
    %c9 = arith.constant 9 : index
    %c0_61 = arith.constant 0 : index
    %110 = vector.load %arg6[%c9, %c0_61] : memref<30x64xf32, #tpu.memory_space<vmem>>, vector<1x32xf32>
    %c10 = arith.constant 10 : index
    %c0_62 = arith.constant 0 : index
    %111 = vector.load %arg6[%c10, %c0_62] : memref<30x64xf32, #tpu.memory_space<vmem>>, vector<1x32xf32>
    %cst_63 = arith.constant dense<0.000000e+00> : vector<16xf32>
    %112 = vector.multi_reduction <add>, %109, %cst_63 [1] : vector<16x32xf32> to vector<16xf32>
    %113 = vector.shape_cast %112 : vector<16xf32> to vector<16x1xf32>
    %cst_64 = arith.constant 3.200000e+01 : f32
    %114 = vector.broadcast %cst_64 : f32 to vector<16x1xf32>
    %115 = arith.divf %113, %114 : vector<16x1xf32>
    %116 = vector.broadcast %115 : vector<16x1xf32> to vector<16x32xf32>
    %117 = arith.subf %109, %116 : vector<16x32xf32>
    %118 = arith.mulf %117, %117 : vector<16x32xf32>
    %cst_65 = arith.constant dense<0.000000e+00> : vector<16xf32>
    %119 = vector.multi_reduction <add>, %118, %cst_65 [1] : vector<16x32xf32> to vector<16xf32>
    %120 = vector.shape_cast %119 : vector<16xf32> to vector<16x1xf32>
    %cst_66 = arith.constant 3.200000e+01 : f32
    %121 = vector.broadcast %cst_66 : f32 to vector<16x1xf32>
    %122 = arith.divf %120, %121 : vector<16x1xf32>
    %cst_67 = arith.constant 9.99999996E-13 : f32
    %123 = vector.broadcast %cst_67 : f32 to vector<16x1xf32>
    %124 = arith.addf %122, %123 : vector<16x1xf32>
    %125 = math.rsqrt %124 : vector<16x1xf32>
    %126 = vector.broadcast %125 : vector<16x1xf32> to vector<16x32xf32>
    %127 = arith.mulf %117, %126 : vector<16x32xf32>
    %128 = vector.broadcast %110 : vector<1x32xf32> to vector<16x32xf32>
    %129 = arith.mulf %127, %128 : vector<16x32xf32>
    %130 = vector.broadcast %111 : vector<1x32xf32> to vector<16x32xf32>
    %131 = arith.addf %129, %130 : vector<16x32xf32>
    %c0_68 = arith.constant 0 : index
    %c0_69 = arith.constant 0 : index
    %c0_70 = arith.constant 0 : index
    %132 = vector.load %arg4[%c0_68, %c0_69, %c0_70] : memref<2x32x64xf32, #tpu.memory_space<vmem>>, vector<1x32x64xf32>
    %133 = vector.shape_cast %132 : vector<1x32x64xf32> to vector<32x64xf32>
    %cst_71 = arith.constant dense<0.000000e+00> : vector<16x64xf32>
    %134 = tpu.matmul %131, %133, %cst_71 {dimension_numbers = #tpu.dot_dimension_numbers<[1], [0], [0], [1], [0, 0, 1, 1], [], []>} : vector<16x32xf32>, vector<32x64xf32>, vector<16x64xf32> -> vector<16x64xf32>
    %c11 = arith.constant 11 : index
    %c0_72 = arith.constant 0 : index
    %135 = vector.load %arg6[%c11, %c0_72] : memref<30x64xf32, #tpu.memory_space<vmem>>, vector<1x64xf32>
    %136 = vector.broadcast %135 : vector<1x64xf32> to vector<16x64xf32>
    %137 = arith.addf %134, %136 : vector<16x64xf32>
    %cst_73 = arith.constant 5.000000e-01 : f32
    %138 = vector.broadcast %cst_73 : f32 to vector<16x64xf32>
    %139 = arith.mulf %138, %137 : vector<16x64xf32>
    %cst_74 = arith.constant 4.471500e-02 : f32
    %140 = vector.broadcast %cst_74 : f32 to vector<16x64xf32>
    %141 = arith.mulf %140, %137 : vector<16x64xf32>
    %142 = arith.mulf %141, %137 : vector<16x64xf32>
    %143 = arith.mulf %142, %137 : vector<16x64xf32>
    %144 = arith.addf %137, %143 : vector<16x64xf32>
    %cst_75 = arith.constant 0.797884583 : f32
    %145 = vector.broadcast %cst_75 : f32 to vector<16x64xf32>
    %146 = arith.mulf %145, %144 : vector<16x64xf32>
    %147 = math.tanh %146 : vector<16x64xf32>
    %cst_76 = arith.constant 1.000000e+00 : f32
    %148 = vector.broadcast %cst_76 : f32 to vector<16x64xf32>
    %149 = arith.addf %148, %147 : vector<16x64xf32>
    %150 = arith.mulf %139, %149 : vector<16x64xf32>
    %c0_77 = arith.constant 0 : index
    %c0_78 = arith.constant 0 : index
    %c0_79 = arith.constant 0 : index
    %151 = vector.load %arg5[%c0_77, %c0_78, %c0_79] : memref<2x64x32xf32, #tpu.memory_space<vmem>>, vector<1x64x32xf32>
    %152 = vector.shape_cast %151 : vector<1x64x32xf32> to vector<64x32xf32>
    %cst_80 = arith.constant dense<0.000000e+00> : vector<16x32xf32>
    %153 = tpu.matmul %150, %152, %cst_80 {dimension_numbers = #tpu.dot_dimension_numbers<[1], [0], [0], [1], [0, 0, 1, 1], [], []>} : vector<16x64xf32>, vector<64x32xf32>, vector<16x32xf32> -> vector<16x32xf32>
    %c12 = arith.constant 12 : index
    %c0_81 = arith.constant 0 : index
    %154 = vector.load %arg6[%c12, %c0_81] : memref<30x64xf32, #tpu.memory_space<vmem>>, vector<1x32xf32>
    %155 = vector.broadcast %154 : vector<1x32xf32> to vector<16x32xf32>
    %156 = arith.addf %153, %155 : vector<16x32xf32>
    %157 = arith.addf %156, %131 : vector<16x32xf32>
    %c13 = arith.constant 13 : index
    %c0_82 = arith.constant 0 : index
    %158 = vector.load %arg6[%c13, %c0_82] : memref<30x64xf32, #tpu.memory_space<vmem>>, vector<1x32xf32>
    %c14 = arith.constant 14 : index
    %c0_83 = arith.constant 0 : index
    %159 = vector.load %arg6[%c14, %c0_83] : memref<30x64xf32, #tpu.memory_space<vmem>>, vector<1x32xf32>
    %cst_84 = arith.constant dense<0.000000e+00> : vector<16xf32>
    %160 = vector.multi_reduction <add>, %157, %cst_84 [1] : vector<16x32xf32> to vector<16xf32>
    %161 = vector.shape_cast %160 : vector<16xf32> to vector<16x1xf32>
    %cst_85 = arith.constant 3.200000e+01 : f32
    %162 = vector.broadcast %cst_85 : f32 to vector<16x1xf32>
    %163 = arith.divf %161, %162 : vector<16x1xf32>
    %164 = vector.broadcast %163 : vector<16x1xf32> to vector<16x32xf32>
    %165 = arith.subf %157, %164 : vector<16x32xf32>
    %166 = arith.mulf %165, %165 : vector<16x32xf32>
    %cst_86 = arith.constant dense<0.000000e+00> : vector<16xf32>
    %167 = vector.multi_reduction <add>, %166, %cst_86 [1] : vector<16x32xf32> to vector<16xf32>
    %168 = vector.shape_cast %167 : vector<16xf32> to vector<16x1xf32>
    %cst_87 = arith.constant 3.200000e+01 : f32
    %169 = vector.broadcast %cst_87 : f32 to vector<16x1xf32>
    %170 = arith.divf %168, %169 : vector<16x1xf32>
    %cst_88 = arith.constant 9.99999996E-13 : f32
    %171 = vector.broadcast %cst_88 : f32 to vector<16x1xf32>
    %172 = arith.addf %170, %171 : vector<16x1xf32>
    %173 = math.rsqrt %172 : vector<16x1xf32>
    %174 = vector.broadcast %173 : vector<16x1xf32> to vector<16x32xf32>
    %175 = arith.mulf %165, %174 : vector<16x32xf32>
    %176 = vector.broadcast %158 : vector<1x32xf32> to vector<16x32xf32>
    %177 = arith.mulf %175, %176 : vector<16x32xf32>
    %178 = vector.broadcast %159 : vector<1x32xf32> to vector<16x32xf32>
    %179 = arith.addf %177, %178 : vector<16x32xf32>
    %c1_89 = arith.constant 1 : index
    %c0_90 = arith.constant 0 : index
    %c0_91 = arith.constant 0 : index
    %c0_92 = arith.constant 0 : index
    %180 = vector.load %arg2[%c1_89, %c0_90, %c0_91, %c0_92] : memref<2x6x32x16xf32, #tpu.memory_space<vmem>>, vector<1x1x32x16xf32>
    %181 = vector.shape_cast %180 : vector<1x1x32x16xf32> to vector<32x16xf32>
    %cst_93 = arith.constant dense<0.000000e+00> : vector<16x16xf32>
    %182 = tpu.matmul %179, %181, %cst_93 {dimension_numbers = #tpu.dot_dimension_numbers<[1], [0], [0], [1], [0, 0, 1, 1], [], []>} : vector<16x32xf32>, vector<32x16xf32>, vector<16x16xf32> -> vector<16x16xf32>
    %c15 = arith.constant 15 : index
    %c0_94 = arith.constant 0 : index
    %183 = vector.load %arg6[%c15, %c0_94] : memref<30x64xf32, #tpu.memory_space<vmem>>, vector<1x16xf32>
    %184 = vector.broadcast %183 : vector<1x16xf32> to vector<16x16xf32>
    %185 = arith.addf %182, %184 : vector<16x16xf32>
    %c1_95 = arith.constant 1 : index
    %c2_96 = arith.constant 2 : index
    %c0_97 = arith.constant 0 : index
    %c0_98 = arith.constant 0 : index
    %186 = vector.load %arg2[%c1_95, %c2_96, %c0_97, %c0_98] : memref<2x6x32x16xf32, #tpu.memory_space<vmem>>, vector<1x1x32x16xf32>
    %187 = vector.shape_cast %186 : vector<1x1x32x16xf32> to vector<32x16xf32>
    %cst_99 = arith.constant dense<0.000000e+00> : vector<16x16xf32>
    %188 = tpu.matmul %179, %187, %cst_99 {dimension_numbers = #tpu.dot_dimension_numbers<[1], [0], [0], [1], [0, 0, 1, 1], [], []>} : vector<16x32xf32>, vector<32x16xf32>, vector<16x16xf32> -> vector<16x16xf32>
    %c17 = arith.constant 17 : index
    %c0_100 = arith.constant 0 : index
    %189 = vector.load %arg6[%c17, %c0_100] : memref<30x64xf32, #tpu.memory_space<vmem>>, vector<1x16xf32>
    %190 = vector.broadcast %189 : vector<1x16xf32> to vector<16x16xf32>
    %191 = arith.addf %188, %190 : vector<16x16xf32>
    %c1_101 = arith.constant 1 : index
    %c4_102 = arith.constant 4 : index
    %c0_103 = arith.constant 0 : index
    %c0_104 = arith.constant 0 : index
    %192 = vector.load %arg2[%c1_101, %c4_102, %c0_103, %c0_104] : memref<2x6x32x16xf32, #tpu.memory_space<vmem>>, vector<1x1x32x16xf32>
    %193 = vector.shape_cast %192 : vector<1x1x32x16xf32> to vector<32x16xf32>
    %cst_105 = arith.constant dense<0.000000e+00> : vector<16x16xf32>
    %194 = tpu.matmul %179, %193, %cst_105 {dimension_numbers = #tpu.dot_dimension_numbers<[1], [0], [0], [1], [0, 0, 1, 1], [], []>} : vector<16x32xf32>, vector<32x16xf32>, vector<16x16xf32> -> vector<16x16xf32>
    %c19 = arith.constant 19 : index
    %c0_106 = arith.constant 0 : index
    %195 = vector.load %arg6[%c19, %c0_106] : memref<30x64xf32, #tpu.memory_space<vmem>>, vector<1x16xf32>
    %196 = vector.broadcast %195 : vector<1x16xf32> to vector<16x16xf32>
    %197 = arith.addf %194, %196 : vector<16x16xf32>
    %198 = vector.shape_cast %185 : vector<16x16xf32> to vector<2x8x16xf32>
    %199 = vector.shape_cast %191 : vector<16x16xf32> to vector<2x8x16xf32>
    %200 = vector.shape_cast %197 : vector<16x16xf32> to vector<2x8x16xf32>
    "tpu.trace_start"() <{level = 10 : i32, message = "bqd,bkd->bqk"}> : () -> ()
    %cst_107 = arith.constant dense<0.000000e+00> : vector<2x8x8xf32>
    %201 = tpu.matmul %198, %199, %cst_107 {dimension_numbers = #tpu.dot_dimension_numbers<[2], [2], [1], [1], [0, 0, 0, 1, 1, 1], [0], [0]>} : vector<2x8x16xf32>, vector<2x8x16xf32>, vector<2x8x8xf32> -> vector<2x8x8xf32>
    "tpu.trace_stop"() : () -> ()
    %202 = vector.broadcast %29 : vector<2x1x8xf32> to vector<2x8x8xf32>
    %203 = arith.addf %201, %202 : vector<2x8x8xf32>
    %cst_108 = arith.constant dense<0xFF800000> : vector<2x8xf32>
    %204 = vector.multi_reduction <maximumf>, %203, %cst_108 [2] : vector<2x8x8xf32> to vector<2x8xf32>
    %205 = vector.shape_cast %204 : vector<2x8xf32> to vector<2x8x1xf32>
    %206 = vector.broadcast %205 : vector<2x8x1xf32> to vector<2x8x8xf32>
    %207 = arith.subf %203, %206 : vector<2x8x8xf32>
    %208 = math.exp %207 : vector<2x8x8xf32>
    %cst_109 = arith.constant dense<0.000000e+00> : vector<2x8xf32>
    %209 = vector.multi_reduction <add>, %208, %cst_109 [2] : vector<2x8x8xf32> to vector<2x8xf32>
    %210 = vector.shape_cast %209 : vector<2x8xf32> to vector<2x8x1xf32>
    %211 = tpu.reciprocal %210 {approx = true} : vector<2x8x1xf32> -> vector<2x8x1xf32>
    %212 = vector.broadcast %211 : vector<2x8x1xf32> to vector<2x8x8xf32>
    %213 = arith.mulf %208, %212 : vector<2x8x8xf32>
    "tpu.trace_start"() <{level = 10 : i32, message = "bqk,bkd->bqd"}> : () -> ()
    %cst_110 = arith.constant dense<0.000000e+00> : vector<2x8x16xf32>
    %214 = tpu.matmul %213, %200, %cst_110 {dimension_numbers = #tpu.dot_dimension_numbers<[2], [1], [1], [2], [0, 0, 0, 1, 1, 2], [0], [0]>} : vector<2x8x8xf32>, vector<2x8x16xf32>, vector<2x8x16xf32> -> vector<2x8x16xf32>
    "tpu.trace_stop"() : () -> ()
    %215 = vector.shape_cast %214 : vector<2x8x16xf32> to vector<16x16xf32>
    %c1_111 = arith.constant 1 : index
    %c1_112 = arith.constant 1 : index
    %c0_113 = arith.constant 0 : index
    %c0_114 = arith.constant 0 : index
    %216 = vector.load %arg2[%c1_111, %c1_112, %c0_113, %c0_114] : memref<2x6x32x16xf32, #tpu.memory_space<vmem>>, vector<1x1x32x16xf32>
    %217 = vector.shape_cast %216 : vector<1x1x32x16xf32> to vector<32x16xf32>
    %cst_115 = arith.constant dense<0.000000e+00> : vector<16x16xf32>
    %218 = tpu.matmul %179, %217, %cst_115 {dimension_numbers = #tpu.dot_dimension_numbers<[1], [0], [0], [1], [0, 0, 1, 1], [], []>} : vector<16x32xf32>, vector<32x16xf32>, vector<16x16xf32> -> vector<16x16xf32>
    %c16 = arith.constant 16 : index
    %c0_116 = arith.constant 0 : index
    %219 = vector.load %arg6[%c16, %c0_116] : memref<30x64xf32, #tpu.memory_space<vmem>>, vector<1x16xf32>
    %220 = vector.broadcast %219 : vector<1x16xf32> to vector<16x16xf32>
    %221 = arith.addf %218, %220 : vector<16x16xf32>
    %c1_117 = arith.constant 1 : index
    %c3_118 = arith.constant 3 : index
    %c0_119 = arith.constant 0 : index
    %c0_120 = arith.constant 0 : index
    %222 = vector.load %arg2[%c1_117, %c3_118, %c0_119, %c0_120] : memref<2x6x32x16xf32, #tpu.memory_space<vmem>>, vector<1x1x32x16xf32>
    %223 = vector.shape_cast %222 : vector<1x1x32x16xf32> to vector<32x16xf32>
    %cst_121 = arith.constant dense<0.000000e+00> : vector<16x16xf32>
    %224 = tpu.matmul %179, %223, %cst_121 {dimension_numbers = #tpu.dot_dimension_numbers<[1], [0], [0], [1], [0, 0, 1, 1], [], []>} : vector<16x32xf32>, vector<32x16xf32>, vector<16x16xf32> -> vector<16x16xf32>
    %c18 = arith.constant 18 : index
    %c0_122 = arith.constant 0 : index
    %225 = vector.load %arg6[%c18, %c0_122] : memref<30x64xf32, #tpu.memory_space<vmem>>, vector<1x16xf32>
    %226 = vector.broadcast %225 : vector<1x16xf32> to vector<16x16xf32>
    %227 = arith.addf %224, %226 : vector<16x16xf32>
    %c1_123 = arith.constant 1 : index
    %c5_124 = arith.constant 5 : index
    %c0_125 = arith.constant 0 : index
    %c0_126 = arith.constant 0 : index
    %228 = vector.load %arg2[%c1_123, %c5_124, %c0_125, %c0_126] : memref<2x6x32x16xf32, #tpu.memory_space<vmem>>, vector<1x1x32x16xf32>
    %229 = vector.shape_cast %228 : vector<1x1x32x16xf32> to vector<32x16xf32>
    %cst_127 = arith.constant dense<0.000000e+00> : vector<16x16xf32>
    %230 = tpu.matmul %179, %229, %cst_127 {dimension_numbers = #tpu.dot_dimension_numbers<[1], [0], [0], [1], [0, 0, 1, 1], [], []>} : vector<16x32xf32>, vector<32x16xf32>, vector<16x16xf32> -> vector<16x16xf32>
    %c20 = arith.constant 20 : index
    %c0_128 = arith.constant 0 : index
    %231 = vector.load %arg6[%c20, %c0_128] : memref<30x64xf32, #tpu.memory_space<vmem>>, vector<1x16xf32>
    %232 = vector.broadcast %231 : vector<1x16xf32> to vector<16x16xf32>
    %233 = arith.addf %230, %232 : vector<16x16xf32>
    %234 = vector.shape_cast %221 : vector<16x16xf32> to vector<2x8x16xf32>
    %235 = vector.shape_cast %227 : vector<16x16xf32> to vector<2x8x16xf32>
    %236 = vector.shape_cast %233 : vector<16x16xf32> to vector<2x8x16xf32>
    "tpu.trace_start"() <{level = 10 : i32, message = "bqd,bkd->bqk"}> : () -> ()
    %cst_129 = arith.constant dense<0.000000e+00> : vector<2x8x8xf32>
    %237 = tpu.matmul %234, %235, %cst_129 {dimension_numbers = #tpu.dot_dimension_numbers<[2], [2], [1], [1], [0, 0, 0, 1, 1, 1], [0], [0]>} : vector<2x8x16xf32>, vector<2x8x16xf32>, vector<2x8x8xf32> -> vector<2x8x8xf32>
    "tpu.trace_stop"() : () -> ()
    %238 = vector.broadcast %29 : vector<2x1x8xf32> to vector<2x8x8xf32>
    %239 = arith.addf %237, %238 : vector<2x8x8xf32>
    %cst_130 = arith.constant dense<0xFF800000> : vector<2x8xf32>
    %240 = vector.multi_reduction <maximumf>, %239, %cst_130 [2] : vector<2x8x8xf32> to vector<2x8xf32>
    %241 = vector.shape_cast %240 : vector<2x8xf32> to vector<2x8x1xf32>
    %242 = vector.broadcast %241 : vector<2x8x1xf32> to vector<2x8x8xf32>
    %243 = arith.subf %239, %242 : vector<2x8x8xf32>
    %244 = math.exp %243 : vector<2x8x8xf32>
    %cst_131 = arith.constant dense<0.000000e+00> : vector<2x8xf32>
    %245 = vector.multi_reduction <add>, %244, %cst_131 [2] : vector<2x8x8xf32> to vector<2x8xf32>
    %246 = vector.shape_cast %245 : vector<2x8xf32> to vector<2x8x1xf32>
    %247 = tpu.reciprocal %246 {approx = true} : vector<2x8x1xf32> -> vector<2x8x1xf32>
    %248 = vector.broadcast %247 : vector<2x8x1xf32> to vector<2x8x8xf32>
    %249 = arith.mulf %244, %248 : vector<2x8x8xf32>
    "tpu.trace_start"() <{level = 10 : i32, message = "bqk,bkd->bqd"}> : () -> ()
    %cst_132 = arith.constant dense<0.000000e+00> : vector<2x8x16xf32>
    %250 = tpu.matmul %249, %236, %cst_132 {dimension_numbers = #tpu.dot_dimension_numbers<[2], [1], [1], [2], [0, 0, 0, 1, 1, 2], [0], [0]>} : vector<2x8x8xf32>, vector<2x8x16xf32>, vector<2x8x16xf32> -> vector<2x8x16xf32>
    "tpu.trace_stop"() : () -> ()
    %251 = vector.shape_cast %250 : vector<2x8x16xf32> to vector<16x16xf32>
    %252 = tpu.concatenate %215, %251 in 1 : vector<16x16xf32>, vector<16x16xf32> -> vector<16x32xf32>
    %c1_133 = arith.constant 1 : index
    %c0_134 = arith.constant 0 : index
    %c0_135 = arith.constant 0 : index
    %253 = vector.load %arg3[%c1_133, %c0_134, %c0_135] : memref<4x32x32xf32, #tpu.memory_space<vmem>>, vector<1x32x32xf32>
    %254 = vector.shape_cast %253 : vector<1x32x32xf32> to vector<32x32xf32>
    %cst_136 = arith.constant dense<0.000000e+00> : vector<16x32xf32>
    %255 = tpu.matmul %252, %254, %cst_136 {dimension_numbers = #tpu.dot_dimension_numbers<[1], [0], [0], [1], [0, 0, 1, 1], [], []>} : vector<16x32xf32>, vector<32x32xf32>, vector<16x32xf32> -> vector<16x32xf32>
    %c21 = arith.constant 21 : index
    %c0_137 = arith.constant 0 : index
    %256 = vector.load %arg6[%c21, %c0_137] : memref<30x64xf32, #tpu.memory_space<vmem>>, vector<1x32xf32>
    %257 = vector.broadcast %256 : vector<1x32xf32> to vector<16x32xf32>
    %258 = arith.addf %255, %257 : vector<16x32xf32>
    %259 = arith.addf %258, %179 : vector<16x32xf32>
    %c22 = arith.constant 22 : index
    %c0_138 = arith.constant 0 : index
    %260 = vector.load %arg6[%c22, %c0_138] : memref<30x64xf32, #tpu.memory_space<vmem>>, vector<1x32xf32>
    %c23 = arith.constant 23 : index
    %c0_139 = arith.constant 0 : index
    %261 = vector.load %arg6[%c23, %c0_139] : memref<30x64xf32, #tpu.memory_space<vmem>>, vector<1x32xf32>
    %cst_140 = arith.constant dense<0.000000e+00> : vector<16xf32>
    %262 = vector.multi_reduction <add>, %259, %cst_140 [1] : vector<16x32xf32> to vector<16xf32>
    %263 = vector.shape_cast %262 : vector<16xf32> to vector<16x1xf32>
    %cst_141 = arith.constant 3.200000e+01 : f32
    %264 = vector.broadcast %cst_141 : f32 to vector<16x1xf32>
    %265 = arith.divf %263, %264 : vector<16x1xf32>
    %266 = vector.broadcast %265 : vector<16x1xf32> to vector<16x32xf32>
    %267 = arith.subf %259, %266 : vector<16x32xf32>
    %268 = arith.mulf %267, %267 : vector<16x32xf32>
    %cst_142 = arith.constant dense<0.000000e+00> : vector<16xf32>
    %269 = vector.multi_reduction <add>, %268, %cst_142 [1] : vector<16x32xf32> to vector<16xf32>
    %270 = vector.shape_cast %269 : vector<16xf32> to vector<16x1xf32>
    %cst_143 = arith.constant 3.200000e+01 : f32
    %271 = vector.broadcast %cst_143 : f32 to vector<16x1xf32>
    %272 = arith.divf %270, %271 : vector<16x1xf32>
    %cst_144 = arith.constant 9.99999996E-13 : f32
    %273 = vector.broadcast %cst_144 : f32 to vector<16x1xf32>
    %274 = arith.addf %272, %273 : vector<16x1xf32>
    %275 = math.rsqrt %274 : vector<16x1xf32>
    %276 = vector.broadcast %275 : vector<16x1xf32> to vector<16x32xf32>
    %277 = arith.mulf %267, %276 : vector<16x32xf32>
    %278 = vector.broadcast %260 : vector<1x32xf32> to vector<16x32xf32>
    %279 = arith.mulf %277, %278 : vector<16x32xf32>
    %280 = vector.broadcast %261 : vector<1x32xf32> to vector<16x32xf32>
    %281 = arith.addf %279, %280 : vector<16x32xf32>
    %c1_145 = arith.constant 1 : index
    %c0_146 = arith.constant 0 : index
    %c0_147 = arith.constant 0 : index
    %282 = vector.load %arg4[%c1_145, %c0_146, %c0_147] : memref<2x32x64xf32, #tpu.memory_space<vmem>>, vector<1x32x64xf32>
    %283 = vector.shape_cast %282 : vector<1x32x64xf32> to vector<32x64xf32>
    %cst_148 = arith.constant dense<0.000000e+00> : vector<16x64xf32>
    %284 = tpu.matmul %281, %283, %cst_148 {dimension_numbers = #tpu.dot_dimension_numbers<[1], [0], [0], [1], [0, 0, 1, 1], [], []>} : vector<16x32xf32>, vector<32x64xf32>, vector<16x64xf32> -> vector<16x64xf32>
    %c24 = arith.constant 24 : index
    %c0_149 = arith.constant 0 : index
    %285 = vector.load %arg6[%c24, %c0_149] : memref<30x64xf32, #tpu.memory_space<vmem>>, vector<1x64xf32>
    %286 = vector.broadcast %285 : vector<1x64xf32> to vector<16x64xf32>
    %287 = arith.addf %284, %286 : vector<16x64xf32>
    %cst_150 = arith.constant 5.000000e-01 : f32
    %288 = vector.broadcast %cst_150 : f32 to vector<16x64xf32>
    %289 = arith.mulf %288, %287 : vector<16x64xf32>
    %cst_151 = arith.constant 4.471500e-02 : f32
    %290 = vector.broadcast %cst_151 : f32 to vector<16x64xf32>
    %291 = arith.mulf %290, %287 : vector<16x64xf32>
    %292 = arith.mulf %291, %287 : vector<16x64xf32>
    %293 = arith.mulf %292, %287 : vector<16x64xf32>
    %294 = arith.addf %287, %293 : vector<16x64xf32>
    %cst_152 = arith.constant 0.797884583 : f32
    %295 = vector.broadcast %cst_152 : f32 to vector<16x64xf32>
    %296 = arith.mulf %295, %294 : vector<16x64xf32>
    %297 = math.tanh %296 : vector<16x64xf32>
    %cst_153 = arith.constant 1.000000e+00 : f32
    %298 = vector.broadcast %cst_153 : f32 to vector<16x64xf32>
    %299 = arith.addf %298, %297 : vector<16x64xf32>
    %300 = arith.mulf %289, %299 : vector<16x64xf32>
    %c1_154 = arith.constant 1 : index
    %c0_155 = arith.constant 0 : index
    %c0_156 = arith.constant 0 : index
    %301 = vector.load %arg5[%c1_154, %c0_155, %c0_156] : memref<2x64x32xf32, #tpu.memory_space<vmem>>, vector<1x64x32xf32>
    %302 = vector.shape_cast %301 : vector<1x64x32xf32> to vector<64x32xf32>
    %cst_157 = arith.constant dense<0.000000e+00> : vector<16x32xf32>
    %303 = tpu.matmul %300, %302, %cst_157 {dimension_numbers = #tpu.dot_dimension_numbers<[1], [0], [0], [1], [0, 0, 1, 1], [], []>} : vector<16x64xf32>, vector<64x32xf32>, vector<16x32xf32> -> vector<16x32xf32>
    %c25 = arith.constant 25 : index
    %c0_158 = arith.constant 0 : index
    %304 = vector.load %arg6[%c25, %c0_158] : memref<30x64xf32, #tpu.memory_space<vmem>>, vector<1x32xf32>
    %305 = vector.broadcast %304 : vector<1x32xf32> to vector<16x32xf32>
    %306 = arith.addf %303, %305 : vector<16x32xf32>
    %307 = arith.addf %306, %281 : vector<16x32xf32>
    %c26 = arith.constant 26 : index
    %c0_159 = arith.constant 0 : index
    %308 = vector.load %arg6[%c26, %c0_159] : memref<30x64xf32, #tpu.memory_space<vmem>>, vector<1x32xf32>
    %c27 = arith.constant 27 : index
    %c0_160 = arith.constant 0 : index
    %309 = vector.load %arg6[%c27, %c0_160] : memref<30x64xf32, #tpu.memory_space<vmem>>, vector<1x32xf32>
    %cst_161 = arith.constant dense<0.000000e+00> : vector<16xf32>
    %310 = vector.multi_reduction <add>, %307, %cst_161 [1] : vector<16x32xf32> to vector<16xf32>
    %311 = vector.shape_cast %310 : vector<16xf32> to vector<16x1xf32>
    %cst_162 = arith.constant 3.200000e+01 : f32
    %312 = vector.broadcast %cst_162 : f32 to vector<16x1xf32>
    %313 = arith.divf %311, %312 : vector<16x1xf32>
    %314 = vector.broadcast %313 : vector<16x1xf32> to vector<16x32xf32>
    %315 = arith.subf %307, %314 : vector<16x32xf32>
    %316 = arith.mulf %315, %315 : vector<16x32xf32>
    %cst_163 = arith.constant dense<0.000000e+00> : vector<16xf32>
    %317 = vector.multi_reduction <add>, %316, %cst_163 [1] : vector<16x32xf32> to vector<16xf32>
    %318 = vector.shape_cast %317 : vector<16xf32> to vector<16x1xf32>
    %cst_164 = arith.constant 3.200000e+01 : f32
    %319 = vector.broadcast %cst_164 : f32 to vector<16x1xf32>
    %320 = arith.divf %318, %319 : vector<16x1xf32>
    %cst_165 = arith.constant 9.99999996E-13 : f32
    %321 = vector.broadcast %cst_165 : f32 to vector<16x1xf32>
    %322 = arith.addf %320, %321 : vector<16x1xf32>
    %323 = math.rsqrt %322 : vector<16x1xf32>
    %324 = vector.broadcast %323 : vector<16x1xf32> to vector<16x32xf32>
    %325 = arith.mulf %315, %324 : vector<16x32xf32>
    %326 = vector.broadcast %308 : vector<1x32xf32> to vector<16x32xf32>
    %327 = arith.mulf %325, %326 : vector<16x32xf32>
    %328 = vector.broadcast %309 : vector<1x32xf32> to vector<16x32xf32>
    %329 = arith.addf %327, %328 : vector<16x32xf32>
    %330 = vector.extract_strided_slice %329 {offsets = [0, 0], sizes = [1, 32], strides = [1, 1]} : vector<16x32xf32> to vector<1x32xf32>
    %331 = vector.extract_strided_slice %329 {offsets = [8, 0], sizes = [1, 32], strides = [1, 1]} : vector<16x32xf32> to vector<1x32xf32>
    %332 = tpu.concatenate %330, %331 in 0 : vector<1x32xf32>, vector<1x32xf32> -> vector<2x32xf32>
    %c2_166 = arith.constant 2 : index
    %c0_167 = arith.constant 0 : index
    %c0_168 = arith.constant 0 : index
    %333 = vector.load %arg3[%c2_166, %c0_167, %c0_168] : memref<4x32x32xf32, #tpu.memory_space<vmem>>, vector<1x32x32xf32>
    %334 = vector.shape_cast %333 : vector<1x32x32xf32> to vector<32x32xf32>
    %cst_169 = arith.constant dense<0.000000e+00> : vector<2x32xf32>
    %335 = tpu.matmul %332, %334, %cst_169 {dimension_numbers = #tpu.dot_dimension_numbers<[1], [0], [0], [1], [0, 0, 1, 1], [], []>} : vector<2x32xf32>, vector<32x32xf32>, vector<2x32xf32> -> vector<2x32xf32>
    %c28 = arith.constant 28 : index
    %c0_170 = arith.constant 0 : index
    %336 = vector.load %arg6[%c28, %c0_170] : memref<30x64xf32, #tpu.memory_space<vmem>>, vector<1x32xf32>
    %337 = vector.broadcast %336 : vector<1x32xf32> to vector<2x32xf32>
    %338 = arith.addf %335, %337 : vector<2x32xf32>
    %339 = math.tanh %338 : vector<2x32xf32>
    %c3_171 = arith.constant 3 : index
    %c0_172 = arith.constant 0 : index
    %c0_173 = arith.constant 0 : index
    %340 = vector.load %arg3[%c3_171, %c0_172, %c0_173] : memref<4x32x32xf32, #tpu.memory_space<vmem>>, vector<1x32x32xf32>
    %341 = vector.shape_cast %340 : vector<1x32x32xf32> to vector<32x32xf32>
    %cst_174 = arith.constant dense<0.000000e+00> : vector<2x32xf32>
    %342 = tpu.matmul %339, %341, %cst_174 {dimension_numbers = #tpu.dot_dimension_numbers<[1], [0], [0], [1], [0, 0, 1, 1], [], []>} : vector<2x32xf32>, vector<32x32xf32>, vector<2x32xf32> -> vector<2x32xf32>
    %c29 = arith.constant 29 : index
    %c0_175 = arith.constant 0 : index
    %343 = vector.load %arg6[%c29, %c0_175] : memref<30x64xf32, #tpu.memory_space<vmem>>, vector<1x32xf32>
    %344 = vector.broadcast %343 : vector<1x32xf32> to vector<2x32xf32>
    %345 = arith.addf %342, %344 : vector<2x32xf32>
    %346 = vector.extract_strided_slice %345 {offsets = [0, 0], sizes = [2, 2], strides = [1, 1]} : vector<2x32xf32> to vector<2x2xf32>
    %c0_176 = arith.constant 0 : index
    %c0_177 = arith.constant 0 : index
    %347 = vector.load %arg7[%c0_176, %c0_177] : memref<2x2xf32, #tpu.memory_space<vmem>>, vector<2x2xf32>
    tpu.vector_store %arg7[%c0_176, %c0_177], %346 {strides = array<i32>} : memref<2x2xf32, #tpu.memory_space<vmem>>, vector<2x2xf32>,
    return
  }
}

</mosaic_0001>

<bundles_post_ra>
// kernel: vanilla_bert_forward.1
= control target key start
LH: loop header
LB: loop body
LE: loop exit
PB: predicated region body
PF: predicated region fallthrough
CT: control target
= control target key end

     0   :  { %vm31_vm0 = vcmask 261120   ;;  %s2388_s0 = inlined_call_operand.vmem [shape: f32[16,32], index: 0, kind: input, shape index: {}]   ;;  %s2389_s1 = inlined_call_operand.vmem [shape: s32[2,8], index: 1, kind: input, shape index: {}]   ;;  %s2390_s2 = inlined_call_operand.vmem [shape: f32[2,6,32,16], index: 2, kind: input, shape index: {}]   ;;  %s2391_s3 = inlined_call_operand.vmem [shape: f32[4,32,32], index: 3, kind: input, shape index: {}]   ;;  %s2392_s4 = inlined_call_operand.vmem [shape: f32[2,32,64], index: 4, kind: input, shape index: {}]   ;;  %s2393_s5 = inlined_call_operand.vmem [shape: f32[2,64,32], index: 5, kind: input, shape index: {}]   ;;  %s2394_s6 = inlined_call_operand.vmem [shape: f32[30,64], index: 6, kind: input, shape index: {}]   ;;  %s2395_s7 = inlined_call_operand.hbm [shape: f32[2,2], index: 7, kind: output, shape index: {}]  }
   0x1   :  { %v27_v0 = vld [vmem:[%s2388_s0] sm:$0xff]  ;;  %v28_v1 = vld [vmem:[%s2388_s0 + $0x8] sm:$0xff] }
   0x2   :  { %v32_v2 = vsel %vm31_vm0, %v27_v0, 0.0  ;;  %v35_v3 = vsel %vm31_vm0, %v28_v1, 0.0 }
   0x3   :  { %33 = vadd.xlane.f32.xlu0 %v32_v2 }
   0xb   :  { %36 = vadd.xlane.f32.xlu0 %v35_v3 }
   0xc   :  { %12 = vsyncpa [#allocation3], 0  ;;  %v1788_v4 = vmov 32.0   ;;  %v98_v21 = vld [vmem:[%s2390_s2 + $0x18] sm:$0xff]  ;;  %v97_v23 = vld [vmem:[%s2390_s2 + $0x10] sm:$0xff]  ;;  %vm194_vm8 = vcmask 130048  }
   0xd   :  { %1698 = vrcp.f32 %v1788_v4  ;;  %v1536_v22 = vld [vmem:[%s2390_s2 + $0x58] sm:$0xff]  ;;  %119 = vmatpush.msra.mxu0 %v98_v21  ;;  %v1535_v24 = vld [vmem:[%s2390_s2 + $0x50] sm:$0xff]  ;;  %1661 = vmatpush.msra.mxu2 %v98_v21  ;;  %v96_v25 = vld [vmem:[%s2390_s2 + $0x8] sm:$0xff]  ;;  %vm247_vm9 = vcmask 64512   ;;  %s1789_s27 = smov 16   ;;  %s1790_s16 = smov [#allocation2]  }
   0xe   :  { %149 = vmatpush.msra.mxu1 %v1536_v22  ;;  %v1534_v26 = vld [vmem:[%s2390_s2 + $0x48] sm:$0xff]  ;;  %v95_v27 = vld [vmem:[%s2390_s2] sm:$0xff]  ;;  %v1542_v32 = vld [vmem:[%s2390_s2 + $0x98] sm:$0xff]  ;;  %s1519_s17 = sshll.u32 %s1790_s16, 4  ;;  %s1521_s18 = sshll.u32 %s2395_s7, 4  ;;  %s1520_s17 = int_to_ptr.vmem [resolvable:$true] %s1519_s17  ;;  %s1522_s18 = int_to_ptr.hbm [resolvable:$true] %s1521_s18 }
   0xf   :  { %120 = vmatpush.msra.mxu0 %v97_v23  ;;  %1662 = vmatpush.msra.mxu2 %v97_v23  ;;  %v1533_v28 = vld [vmem:[%s2390_s2 + $0x40] sm:$0xff]  ;;  %v1554_v33 = vld [vmem:[%s2390_s2 + $0x38] sm:$0xff]  ;;  %v1541_v34 = vld [vmem:[%s2390_s2 + $0x90] sm:$0xff] }
  0x10   :  { %150 = vmatpush.msra.mxu1 %v1535_v24  ;;  %v1553_v35 = vld [vmem:[%s2390_s2 + $0x30] sm:$0xff]  ;;  %v1540_v36 = vld [vmem:[%s2390_s2 + $0x88] sm:$0xff]  ;;  %v1539_v40 = vld [vmem:[%s2390_s2 + $0x80] sm:$0xff] }
  0x11   :  { %121 = vmatpush.msra.mxu0 %v96_v25  ;;  %1663 = vmatpush.msra.mxu2 %v96_v25  ;;  %v1552_v37 = vld [vmem:[%s2390_s2 + $0x28] sm:$0xff]  ;;  %v1551_v41 = vld [vmem:[%s2390_s2 + $0x20] sm:$0xff]  ;;  %v1559_v2 = vld [vmem:[%s2390_s2 + $0x70] sm:$0xff] }
  0x12   :  { %151 = vmatpush.msra.mxu1 %v1534_v26  ;;  %v1668_v51 = vld [vmem:[%s2394_s6] ss:$0 sm:$0xff]  ;;  %v1669_v54 = vld [vmem:[%s2394_s6 + $0x1] ss:$0 sm:$0xff]  ;;  %v1558_v3 = vld [vmem:[%s2390_s2 + $0x68] sm:$0xff] }
  0x13   :  { %v1699_v5 = vpop.eup %1698  ;;  %122 = vmatpush.msra.mxu0 %v95_v27  ;;  %1664 = vmatpush.msra.mxu2 %v95_v27  ;;  %v1557_v4 = vld [vmem:[%s2390_s2 + $0x60] sm:$0xff] }
  0x14   :  { %v39_v6 = vmul.f32 32.0, %v1699_v5  ;;  %vm43_vm1 = vweird.f32 %v1699_v5  ;;  %152 = vmatpush.msra.mxu1 %v1533_v28  ;;  %v1674_v21 = vld [vmem:[%s2394_s6 + $0x5] ss:$0 sm:$0xff]  ;;  %v89_v24 = vld [vmem:[%s2389_s1] sm:$0x3] }
  0x15   :  { %179 = vmatpush.msrb.mxu2 %v1542_v32  ;;  %v90_v25 = vcvt.s32.f32 %v89_v24 }
  0x16   :  { %v40_v7 = vsub.f32 1.0, %v39_v6  ;;  %335 = vmatpush.msrb.mxu1 %v1554_v33  ;;  %v1670_v6 = vld [vmem:[%s2394_s6 + $0x2] ss:$0 sm:$0xff] }
  0x17   :  { %180 = vmatpush.msrb.mxu2 %v1541_v34  ;;  %v1530_v26 = vadd.f32 -1.0, %v90_v25 }
  0x18   :  { %v41_v8 = vmul.f32 %v1699_v5, %v40_v7  ;;  %336 = vmatpush.msrb.mxu1 %v1553_v35 }
  0x19   :  { %181 = vmatpush.msrb.mxu2 %v1540_v36  ;;  %v92_v27 = vmul.f32 1e+09, %v1530_v26 }
  0x1a   :  { %v42_v9 = vadd.f32 %v1699_v5, %v41_v8  ;;  %337 = vmatpush.msrb.mxu1 %v1552_v37 }
  0x1b   :  { %182 = vmatpush.msrb.mxu2 %v1539_v40  ;;  %v1967_v28 = vperm.slane %v92_v27, 0  ;;  %v94_v32 = vrot.slane %v92_v27, 1 }
  0x1c   :  { %v1839_v10 = vsel %vm43_vm1, %v1699_v5, %v42_v9  ;;  %338 = vmatpush.msrb.mxu1 %v1551_v41  ;;  %v1671_v5 = vld [vmem:[%s2394_s6 + $0x4] ss:$0 sm:$0xff]  ;;  %vm688_vm1 = vcmask 523264  }
  0x1d   :  { %v1971_v33 = vperm.slane %v94_v32, 0 }
  0x76   :  { %v34_v11 = vpop.xlane.xlu0 %33 }
  0x77   :  { %v45_v12 = vmul.f32 %v1839_v10, %v34_v11 }
  0x79   :  { %v1842_v13 = vsub.f32 %v27_v0, %v45_v12 }
  0x7b   :  { %v49_v14 = vmul.f32 %v1842_v13, %v1842_v13 }
  0x7d   :  { %v51_v15 = vsel %vm31_vm0, %v49_v14, 0.0 }
  0x7e   :  { %52 = vadd.xlane.f32.xlu1 %v51_v15  ;;  %v37_v16 = vpop.xlane.xlu0 %36 }
  0x7f   :  { %v46_v17 = vmul.f32 %v1839_v10, %v37_v16  ;;  %v1673_v16 = vld [vmem:[%s2394_s6 + $0x6] ss:$0 sm:$0xff] }
  0x81   :  { %v1848_v18 = vsub.f32 %v28_v1, %v46_v17  ;;  %v1560_v1 = vld [vmem:[%s2390_s2 + $0x78] sm:$0xff] }
  0x83   :  { %v50_v19 = vmul.f32 %v1848_v18, %v1848_v18 }
  0x85   :  { %v54_v20 = vsel %vm31_vm0, %v50_v19, 0.0 }
  0x86   :  { %55 = vadd.xlane.f32.xlu1 %v54_v20 }
  0xf1   :  { %v53_v29 = vpop.xlane.xlu1 %52 }
  0xf2   :  { %v57_v30 = vmul.f32 %v53_v29, %v1839_v10 }
  0xf4   :  { %v59_v31 = vadd.f32 1e-12, %v57_v30 }
  0xf6   :  { %1700 = vrsqrt.f32 %v59_v31  ;;  %vm67_vm3 = vweird.f32 %v59_v31 }
  0xf9   :  { %v56_v38 = vpop.xlane.xlu1 %55 }
  0xfa   :  { %v58_v39 = vmul.f32 %v56_v38, %v1839_v10 }
  0xfc   :  { %v1701_v42 = vpop.eup %1700  ;;  %v60_v43 = vadd.f32 1e-12, %v58_v39 }
  0xfd   :  { %v62_v44 = vmul.f32 %v1701_v42, %v59_v31  ;;  %vm68_vm2 = vweird.f32 %v1701_v42 }
  0xfe   :  { %1702 = vrsqrt.f32 %v60_v43  ;;  %vm69_vm4 = vmor %vm67_vm3, %vm68_vm2  ;;  %vm77_vm6 = vweird.f32 %v60_v43 }
  0xff   :  { %v63_v45 = vmul.f32 %v1701_v42, %v62_v44 }
 0x101   :  { %v64_v46 = vmul.f32 0.5, %v63_v45 }
 0x103   :  { %v65_v47 = vsub.f32 1.5, %v64_v46 }
 0x104   :  { %v1703_v48 = vpop.eup %1702 }
 0x105   :  { %v66_v49 = vmul.f32 %v1701_v42, %v65_v47  ;;  %v72_v50 = vmul.f32 %v1703_v48, %v60_v43  ;;  %vm78_vm5 = vweird.f32 %v1703_v48  ;;  %v1566_v47 = vld [vmem:[%s2390_s2 + $0xb8] sm:$0xff] }
 0x106   :  { %vm79_vm7 = vmor %vm77_vm6, %vm78_vm5 }
 0x107   :  { %v70_v52 = vsel %vm69_vm4, %v1701_v42, %v66_v49  ;;  %v73_v53 = vmul.f32 %v1703_v48, %v72_v50  ;;  %v1564_v49 = vld [vmem:[%s2390_s2 + $0xa8] sm:$0xff]  ;;  %v1563_v50 = vld [vmem:[%s2390_s2 + $0xa0] sm:$0xff] }
 0x108   :  { %v81_v55 = vmul.f32 %v70_v52, %v1842_v13 }
 0x109   :  { %v74_v56 = vmul.f32 0.5, %v73_v53 }
 0x10a   :  { %v84_v57 = vmul.f32 %v1668_v51, %v81_v55 }
 0x10b   :  { %v75_v58 = vsub.f32 1.5, %v74_v56 }
 0x10c   :  { %v1910_v59 = vadd.f32 %v1669_v54, %v84_v57 }
 0x10d   :  { %v76_v60 = vmul.f32 %v1703_v48, %v75_v58 }
 0x10e   :  { %1531 = vmatmul.msk.f32.vlgmr.msra.gmra.mxu0 %vm31_vm0, %v1910_v59  ;;  %1537 = vmatmul.msk.f32.vlgmr.msra.gmra.mxu1 %vm31_vm0, %v1910_v59 }
 0x10f   :  { %v80_v61 = vsel %vm79_vm7, %v1703_v48, %v76_v60  ;;  %v1565_v48 = vld [vmem:[%s2390_s2 + $0xb0] sm:$0xff] }
 0x110   :  { %v82_v62 = vmul.f32 %v80_v61, %v1848_v18  ;;  %v1672_v61 = vld [vmem:[%s2394_s6 + $0x3] ss:$0 sm:$0xff] }
 0x112   :  { %v85_v63 = vmul.f32 %v1668_v51, %v82_v62 }
 0x114   :  { %v1917_v0 = vadd.f32 %v1669_v54, %v85_v63 }
 0x116   :  { %1532 = vmatmul.msk.f32.vlgmr.msra.gmra.mxu2 %vm31_vm0, %v1917_v0  ;;  %1538 = vmatmul.msk.f32.gmra.mxu1 %vm31_vm0, %v1917_v0 }
 0x117   :  { %365 = vmatpush.msra.mxu2 %v1560_v1 }
 0x119   :  { %366 = vmatpush.msra.mxu2 %v1559_v2 }
 0x11b   :  { %367 = vmatpush.msra.mxu2 %v1558_v3 }
 0x11d   :  { %368 = vmatpush.msra.mxu2 %v1557_v4  ;;  %v1675_v4 = vld [vmem:[%s2394_s6 + $0x7] ss:$0 sm:$0xff] }
 0x11e   :  { %1543 = vmatmul.msk.f32.vlgmr.msrb.gmra.mxu2 %vm31_vm0, %v1910_v59  ;;  %1555 = vmatmul.msk.f32.vlgmr.msrb.gmra.mxu1 %vm31_vm0, %v1910_v59 }
 0x126   :  { %1544 = vmatmul.msk.f32.gmra.mxu2 %vm31_vm0, %v1917_v0  ;;  %1556 = vmatmul.msk.f32.gmra.mxu1 %vm31_vm0, %v1917_v0 }
 0x12e   :  { %1561 = vmatmul.msk.f32.vlgmr.msra.gmra.mxu2 %vm31_vm0, %v1910_v59 }
 0x136   :  { %1562 = vmatmul.msk.f32.gmra.mxu2 %vm31_vm0, %v1917_v0 }
 0x18b   :  { %v154_v7 = vpop.f32.mrf.mxu1  ;;  %v124_v8 = vpop.f32.mrf.mxu0 }
 0x18c   :  { %v155_v9 = vadd.f32 %v1671_v5, %v154_v7  ;;  %v125_v11 = vadd.f32 %v1670_v6, %v124_v8 }
 0x18e   :  { %1545 = vmatpush.xpose.msk.msra.mxu3 %vm194_vm8, %v155_v9 }
 0x191   :  { %1546 = vmatmul.msk.f32.vlgmr.msra.gmra.mxu3 %vm194_vm8, %v125_v11 }
 0x193   :  { %v157_v12 = vpop.f32.mrf.mxu1 }
 0x194   :  { %v158_v13 = vadd.f32 %v1671_v5, %v157_v12 }
 0x196   :  { %1547 = vmatpush.xpose.msk.msrb.mxu3 %vm194_vm8, %v158_v13 }
 0x199   :  { %v127_v14 = vpop.f32.mrf.mxu2 }
 0x19a   :  { %v128_v15 = vadd.f32 %v1670_v6, %v127_v14 }
 0x19b   :  { %v340_v60 = vpop.f32.mrf.mxu1 }
 0x19c   :  { %1548 = vmatmul.msk.f32.vlgmr.msrb.gmra.mxu3 %vm194_vm8, %v128_v15  ;;  %v341_v62 = vadd.f32 %v1672_v61, %v340_v60 }
 0x1a1   :  { %v184_v17 = vpop.f32.mrf.mxu2 }
 0x1a2   :  { %v185_v18 = vadd.f32 %v1673_v16, %v184_v17 }
 0x1a3   :  { %v343_v63 = vpop.f32.mrf.mxu1 }
 0x1a4   :  { %288 = vmatpush.msra.mxu3 %v185_v18  ;;  %v344_v1 = vadd.f32 %v1672_v61, %v343_v63  ;;  %v627_v63 = vld [vmem:[%s2392_s4 + $0x10] sm:$0xff] }
 0x1a6   :  { %395 = vmatpush.msrb.mxu3 %v1566_v47 }
 0x1a8   :  { %396 = vmatpush.msrb.mxu3 %v1565_v48 }
 0x1a9   :  { %v187_v19 = vpop.f32.mrf.mxu2 }
 0x1aa   :  { %v188_v20 = vadd.f32 %v1673_v16, %v187_v19  ;;  %397 = vmatpush.msrb.mxu3 %v1564_v49 }
 0x1ac   :  { %311 = vmatpush.msrb.mxu0 %v188_v20  ;;  %398 = vmatpush.msrb.mxu3 %v1563_v50 }
 0x1b1   :  { %v370_v22 = vpop.f32.mrf.mxu2 }
 0x1b2   :  { %v371_v23 = vadd.f32 %v1674_v21, %v370_v22 }
 0x1b4   :  { %1569 = vmatpush.xpose.msk.msra.mxu0 %vm194_vm8, %v371_v23 }
 0x1b9   :  { %v373_v55 = vpop.f32.mrf.mxu2 }
 0x1ba   :  { %v374_v58 = vadd.f32 %v1674_v21, %v373_v55 }
 0x214   :  { %v218_v29 = vpop.f32.mrf.mxu3 }
 0x215   :  { %v219_v30 = vadd.f32 %v218_v29, %v1967_v28 }
 0x217   :  { %v248_v31 = vsel %vm247_vm9, %v219_v30, -inf }
 0x218   :  { %249 = vmax.xlane.f32.xlu0 %v248_v31 }
 0x21f   :  { %v244_v34 = vpop.f32.mrf.mxu3 }
 0x220   :  { %v245_v35 = vadd.f32 %v244_v34, %v1971_v33  ;;  %v539_v34 = vld [vmem:[%s2391_s3 + $0x18] sm:$0xff] }
 0x222   :  { %v251_v36 = vsel %vm247_vm9, %v245_v35, -inf }
 0x223   :  { %252 = vmax.xlane.f32.xlu2 %v251_v36  ;;  %v537_v36 = vld [vmem:[%s2391_s3 + $0x8] sm:$0xff] }
 0x28b   :  { %v250_v37 = vpop.xlane.xlu0 %249 }
 0x28c   :  { %v254_v38 = vsub.f32 %v219_v30, %v250_v37 }
 0x28e   :  { %v256_v39 = vmul.f32 1.442695, %v254_v38 }
 0x290   :  { %1704 = vpow2.f32 %v256_v39  ;;  %v536_v39 = vld [vmem:[%s2391_s3] sm:$0xff] }
 0x296   :  { %v1705_v40 = vpop.eup %1704  ;;  %v253_v41 = vpop.xlane.xlu2 %252 }
 0x297   :  { %v255_v42 = vsub.f32 %v245_v35, %v253_v41  ;;  %v260_v43 = vsel %vm247_vm9, %v1705_v40, 0.0  ;;  %v538_v35 = vld [vmem:[%s2391_s3 + $0x10] sm:$0xff] }
 0x298   :  { %261 = vadd.xlane.f32.xlu1 %v260_v43 }
 0x299   :  { %v258_v44 = vmul.f32 1.442695, %v255_v42 }
 0x29b   :  { %1706 = vpow2.f32 %v258_v44  ;;  %v1676_v44 = vld [vmem:[%s2394_s6 + $0x8] ss:$0 sm:$0xff] }
 0x2a1   :  { %v1707_v45 = vpop.eup %1706 }
 0x2a2   :  { %v263_v46 = vsel %vm247_vm9, %v1707_v45, 0.0 }
 0x2a3   :  { %264 = vadd.xlane.f32.xlu2 %v263_v46 }
 0x30b   :  { %v262_v51 = vpop.xlane.xlu1 %261 }
 0x30c   :  { %1708 = vrcp.f32 %v262_v51 }
 0x312   :  { %v1709_v52 = vpop.eup %1708 }
 0x313   :  { %v268_v53 = vmul.f32 %v1709_v52, %v1705_v40 }
 0x315   :  { %1549 = vmatmul.msk.f32.vlgmr.msra.gmra.mxu3 %vm247_vm9, %v268_v53 }
 0x316   :  { %v265_v54 = vpop.xlane.xlu2 %264  ;;  %560 = vmatpush.msra.mxu3 %v539_v34  ;;  %v685_v34 = vld [vmem:[%s2393_s5 + $0x38] sm:$0xff] }
 0x317   :  { %1710 = vrcp.f32 %v265_v54 }
 0x318   :  { %561 = vmatpush.msra.mxu3 %v538_v35  ;;  %v684_v35 = vld [vmem:[%s2393_s5 + $0x30] sm:$0xff] }
 0x31a   :  { %562 = vmatpush.msra.mxu3 %v537_v36  ;;  %v683_v36 = vld [vmem:[%s2393_s5 + $0x28] sm:$0xff] }
 0x31c   :  { %563 = vmatpush.msra.mxu3 %v536_v39  ;;  %v680_v39 = vld [vmem:[%s2393_s5 + $0x10] sm:$0xff] }
 0x31d   :  { %v1711_v56 = vpop.eup %1710  ;;  %1567 = vmatmul.msk.f32.vlgmr.msrb.gmra.mxu3 %vm31_vm0, %v1910_v59 }
 0x31e   :  { %v269_v57 = vmul.f32 %v1711_v56, %v1707_v45 }
 0x320   :  { %1550 = vmatmul.msk.f32.vlgmr.msrb.gmra.mxu0 %vm247_vm9, %v269_v57 }
 0x321   :  { %1571 = vmatpush.xpose.msk.msrb.mxu0 %vm194_vm8, %v374_v58 }
 0x325   :  { %1568 = vmatmul.msk.f32.gmra.mxu3 %vm31_vm0, %v1917_v0 }
 0x328   :  { %1570 = vmatmul.msk.f32.vlgmr.msra.gmra.mxu0 %vm194_vm8, %v341_v62 }
 0x330   :  { %1572 = vmatmul.msk.f32.vlgmr.msrb.gmra.mxu0 %vm194_vm8, %v344_v1  ;;  %v626_v1 = vld [vmem:[%s2392_s4 + $0x8] sm:$0xff] }
 0x398   :  { %v290_v2 = vpop.f32.mrf.mxu3 }
 0x39d   :  { %v313_v3 = vpop.f32.mrf.mxu0 }
 0x3a0   :  { %v400_v5 = vpop.f32.mrf.mxu3 }
 0x3a1   :  { %v401_v6 = vadd.f32 %v1675_v4, %v400_v5 }
 0x3a3   :  { %498 = vmatpush.msra.mxu1 %v401_v6 }
 0x3a5   :  { %v429_v7 = vpop.f32.mrf.mxu0  ;;  %703 = vmatpush.msrb.mxu1 %v685_v34  ;;  %v1593_v34 = vld [vmem:[%s2390_s2 + $0x140] sm:$0xff] }
 0x3a6   :  { %v430_v8 = vadd.f32 %v429_v7, %v1967_v28 }
 0x3a7   :  { %704 = vmatpush.msrb.mxu1 %v684_v35 }
 0x3a8   :  { %v403_v9 = vpop.f32.mrf.mxu3  ;;  %v458_v11 = vsel %vm247_vm9, %v430_v8, -inf }
 0x3a9   :  { %v404_v12 = vadd.f32 %v1675_v4, %v403_v9  ;;  %459 = vmax.xlane.f32.xlu2 %v458_v11  ;;  %705 = vmatpush.msrb.mxu1 %v683_v36 }
 0x3ab   :  { %521 = vmatpush.msrb.mxu2 %v404_v12 }
 0x3ad   :  { %v455_v13 = vpop.f32.mrf.mxu0 }
 0x3ae   :  { %v456_v14 = vadd.f32 %v455_v13, %v1971_v33 }
 0x3b0   :  { %v461_v15 = vsel %vm247_vm9, %v456_v14, -inf }
 0x3b1   :  { %462 = vmax.xlane.f32.xlu0 %v461_v15 }
 0x41c   :  { %v460_v16 = vpop.xlane.xlu2 %459 }
 0x41d   :  { %v464_v17 = vsub.f32 %v430_v8, %v460_v16  ;;  %v1677_v16 = vld [vmem:[%s2394_s6 + $0x9] ss:$0 sm:$0xff] }
 0x41f   :  { %v466_v18 = vmul.f32 1.442695, %v464_v17 }
 0x421   :  { %1712 = vpow2.f32 %v466_v18 }
 0x424   :  { %v463_v19 = vpop.xlane.xlu0 %462 }
 0x425   :  { %v465_v20 = vsub.f32 %v456_v14, %v463_v19  ;;  %v1678_v19 = vld [vmem:[%s2394_s6 + $0xa] ss:$0 sm:$0xff] }
 0x427   :  { %v1713_v21 = vpop.eup %1712  ;;  %v468_v22 = vmul.f32 1.442695, %v465_v20 }
 0x428   :  { %v470_v23 = vsel %vm247_vm9, %v1713_v21, 0.0 }
 0x429   :  { %1714 = vpow2.f32 %v468_v22  ;;  %471 = vadd.xlane.f32.xlu1 %v470_v23 }
 0x42f   :  { %v1715_v24 = vpop.eup %1714 }
 0x430   :  { %v473_v25 = vsel %vm247_vm9, %v1715_v24, 0.0 }
 0x431   :  { %474 = vadd.xlane.f32.xlu2 %v473_v25 }
 0x49c   :  { %v472_v26 = vpop.xlane.xlu1 %471 }
 0x49d   :  { %1716 = vrcp.f32 %v472_v26 }
 0x4a3   :  { %v1717_v27 = vpop.eup %1716 }
 0x4a4   :  { %v478_v29 = vmul.f32 %v1717_v27, %v1713_v21  ;;  %v475_v30 = vpop.xlane.xlu2 %474 }
 0x4a5   :  { %1718 = vrcp.f32 %v475_v30 }
 0x4a6   :  { %1573 = vmatmul.msk.f32.vlgmr.msra.gmra.mxu1 %vm247_vm9, %v478_v29 }
 0x4ab   :  { %v1719_v31 = vpop.eup %1718 }
 0x4ac   :  { %v479_v32 = vmul.f32 %v1719_v31, %v1715_v24 }
 0x4ae   :  { %1574 = vmatmul.msk.f32.vlgmr.msrb.gmra.mxu2 %vm247_vm9, %v479_v32 }
 0x523   :  { %v500_v37 = vpop.f32.mrf.mxu1 }
 0x524   :  { %528 = vrot.lane.b32.xlu0 %v500_v37, %s1789_s27  ;;  %v682_v37 = vld [vmem:[%s2393_s5 + $0x20] sm:$0xff] }
 0x525   :  { %706 = vmatpush.msrb.mxu1 %v682_v37 }
 0x531   :  { %v523_v38 = vpop.f32.mrf.mxu2 }
 0x532   :  { %530 = vrot.lane.b32.xlu1 %v523_v38, %s1789_s27  ;;  %v681_v38 = vld [vmem:[%s2393_s5 + $0x18] sm:$0xff] }
 0x533   :  { %707 = vmatpush.msrb.mxu1 %v681_v38 }
 0x535   :  { %708 = vmatpush.msrb.mxu1 %v680_v39 }
 0x596   :  { %v529_v40 = vpop.permute.xlu0 %528 }
 0x597   :  { %v534_v41 = vsel %vm194_vm8, %v290_v2, %v529_v40  ;;  %v625_v2 = vld [vmem:[%s2392_s4] sm:$0xff]  ;;  %v679_v40 = vld [vmem:[%s2393_s5 + $0x8] sm:$0xff] }
 0x598   :  { %1575 = vmatmul.msk.f32.vlgmr.msra.gmra.mxu3 %vm31_vm0, %v534_v41  ;;  %v678_v41 = vld [vmem:[%s2393_s5] sm:$0xff]  ;;  %709 = vmatpush.msrb.mxu1 %v679_v40  ;;  %v1608_v40 = vld [vmem:[%s2390_s2 + $0xf8] sm:$0xff] }
 0x59a   :  { %710 = vmatpush.msrb.mxu1 %v678_v41  ;;  %v1607_v41 = vld [vmem:[%s2390_s2 + $0xf0] sm:$0xff] }
 0x5a4   :  { %v531_v42 = vpop.permute.xlu1 %530 }
 0x5a5   :  { %v535_v43 = vsel %vm194_vm8, %v313_v3, %v531_v42  ;;  %v1679_v42 = vld [vmem:[%s2394_s6 + $0xb] ss:$0 sm:$0xff] }
 0x5a6   :  { %1576 = vmatmul.msk.f32.gmra.mxu3 %vm31_vm0, %v535_v43 }
 0x61b   :  { %v565_v45 = vpop.f32.mrf.mxu3 }
 0x61c   :  { %v566_v46 = vadd.f32 %v1676_v44, %v565_v45 }
 0x61e   :  { %v571_v47 = vadd.f32 %v566_v46, %v1910_v59 }
 0x620   :  { %v575_v48 = vsel %vm31_vm0, %v571_v47, 0.0 }
 0x621   :  { %576 = vadd.xlane.f32.xlu2 %v575_v48 }
 0x629   :  { %v568_v49 = vpop.f32.mrf.mxu3 }
 0x62a   :  { %v569_v50 = vadd.f32 %v1676_v44, %v568_v49 }
 0x62c   :  { %v572_v51 = vadd.f32 %v569_v50, %v1917_v0  ;;  %v628_v0 = vld [vmem:[%s2392_s4 + $0x18] sm:$0xff] }
 0x62d   :  { %649 = vmatpush.msra.mxu0 %v628_v0 }
 0x62e   :  { %v578_v52 = vsel %vm31_vm0, %v572_v51, 0.0 }
 0x62f   :  { %579 = vadd.xlane.f32.xlu2 %v578_v52  ;;  %650 = vmatpush.msra.mxu0 %v627_v63 }
 0x631   :  { %651 = vmatpush.msra.mxu0 %v626_v1  ;;  %v1680_v1 = vld [vmem:[%s2394_s6 + $0xc] ss:$0 sm:$0xff] }
 0x633   :  { %652 = vmatpush.msra.mxu0 %v625_v2 }
 0x694   :  { %v577_v53 = vpop.xlane.xlu2 %576 }
 0x695   :  { %v581_v54 = vmul.f32 %v577_v53, %v1839_v10 }
 0x697   :  { %v583_v55 = vsub.f32 %v571_v47, %v581_v54 }
 0x699   :  { %v585_v56 = vmul.f32 %v583_v55, %v583_v55 }
 0x69b   :  { %v587_v57 = vsel %vm31_vm0, %v585_v56, 0.0 }
 0x69c   :  { %588 = vadd.xlane.f32.xlu2 %v587_v57 }
 0x6a2   :  { %v580_v58 = vpop.xlane.xlu2 %579 }
 0x6a3   :  { %v582_v59 = vmul.f32 %v580_v58, %v1839_v10 }
 0x6a5   :  { %v584_v60 = vsub.f32 %v572_v51, %v582_v59 }
 0x6a7   :  { %v586_v61 = vmul.f32 %v584_v60, %v584_v60 }
 0x6a9   :  { %v590_v62 = vsel %vm31_vm0, %v586_v61, 0.0 }
 0x6aa   :  { %591 = vadd.xlane.f32.xlu0 %v590_v62 }
 0x70f   :  { %v589_v3 = vpop.xlane.xlu2 %588 }
 0x710   :  { %v593_v4 = vmul.f32 %v589_v3, %v1839_v10 }
 0x712   :  { %v595_v5 = vadd.f32 1e-12, %v593_v4 }
 0x714   :  { %1720 = vrsqrt.f32 %v595_v5  ;;  %vm603_vm11 = vweird.f32 %v595_v5 }
 0x71a   :  { %v1721_v6 = vpop.eup %1720 }
 0x71b   :  { %v598_v7 = vmul.f32 %v1721_v6, %v595_v5  ;;  %vm604_vm10 = vweird.f32 %v1721_v6 }
 0x71c   :  { %vm605_vm12 = vmor %vm603_vm11, %vm604_vm10 }
 0x71d   :  { %v599_v8 = vmul.f32 %v1721_v6, %v598_v7  ;;  %v592_v9 = vpop.xlane.xlu0 %591 }
 0x71e   :  { %v594_v11 = vmul.f32 %v592_v9, %v1839_v10 }
 0x71f   :  { %v600_v12 = vmul.f32 0.5, %v599_v8 }
 0x720   :  { %v596_v13 = vadd.f32 1e-12, %v594_v11 }
 0x721   :  { %v601_v14 = vsub.f32 1.5, %v600_v12 }
 0x722   :  { %1722 = vrsqrt.f32 %v596_v13  ;;  %vm613_vm14 = vweird.f32 %v596_v13 }
 0x723   :  { %v602_v15 = vmul.f32 %v1721_v6, %v601_v14 }
 0x725   :  { %v606_v17 = vsel %vm605_vm12, %v1721_v6, %v602_v15 }
 0x726   :  { %v617_v18 = vmul.f32 %v606_v17, %v583_v55 }
 0x728   :  { %v1723_v20 = vpop.eup %1722  ;;  %v620_v21 = vmul.f32 %v1677_v16, %v617_v18 }
 0x729   :  { %v608_v22 = vmul.f32 %v1723_v20, %v596_v13  ;;  %vm614_vm13 = vweird.f32 %v1723_v20 }
 0x72a   :  { %v623_v23 = vadd.f32 %v1678_v19, %v620_v21  ;;  %vm615_vm15 = vmor %vm613_vm14, %vm614_vm13  ;;  %v1584_v21 = vld [vmem:[%s2390_s2 + $0xd8] sm:$0xff] }
 0x72b   :  { %v609_v24 = vmul.f32 %v1723_v20, %v608_v22  ;;  %v1590_v22 = vld [vmem:[%s2390_s2 + $0x118] sm:$0xff]  ;;  %797 = vmatpush.msra.mxu2 %v1584_v21  ;;  %v1612_v21 = vld [vmem:[%s2390_s2 + $0x128] sm:$0xff] }
 0x72c   :  { %1577 = vmatmul.msk.f32.vlgmr.msra.gmra.mxu0 %vm31_vm0, %v623_v23  ;;  %827 = vmatpush.msrb.mxu3 %v1590_v22  ;;  %v1611_v22 = vld [vmem:[%s2390_s2 + $0x120] sm:$0xff] }
 0x72d   :  { %v610_v25 = vmul.f32 0.5, %v609_v24  ;;  %v1583_v24 = vld [vmem:[%s2390_s2 + $0xd0] sm:$0xff] }
 0x72e   :  { %798 = vmatpush.msra.mxu2 %v1583_v24 }
 0x72f   :  { %v611_v26 = vsub.f32 1.5, %v610_v25  ;;  %v1589_v25 = vld [vmem:[%s2390_s2 + $0x110] sm:$0xff] }
 0x730   :  { %828 = vmatpush.msrb.mxu3 %v1589_v25 }
 0x731   :  { %v612_v27 = vmul.f32 %v1723_v20, %v611_v26  ;;  %v1595_v26 = vld [vmem:[%s2390_s2 + $0x150] sm:$0xff] }
 0x733   :  { %v616_v29 = vsel %vm615_vm15, %v1723_v20, %v612_v27  ;;  %v1582_v27 = vld [vmem:[%s2390_s2 + $0xc8] sm:$0xff] }
 0x734   :  { %v618_v30 = vmul.f32 %v616_v29, %v584_v60  ;;  %v1588_v29 = vld [vmem:[%s2390_s2 + $0x108] sm:$0xff]  ;;  %799 = vmatpush.msra.mxu2 %v1582_v27 }
 0x735   :  { %829 = vmatpush.msrb.mxu3 %v1588_v29 }
 0x736   :  { %v621_v31 = vmul.f32 %v1677_v16, %v618_v30  ;;  %v1594_v30 = vld [vmem:[%s2390_s2 + $0x148] sm:$0xff] }
 0x738   :  { %v624_v32 = vadd.f32 %v1678_v19, %v621_v31  ;;  %v1581_v31 = vld [vmem:[%s2390_s2 + $0xc0] sm:$0xff] }
 0x739   :  { %800 = vmatpush.msra.mxu2 %v1581_v31 }
 0x73a   :  { %1578 = vmatmul.msk.f32.gmra.mxu0 %vm31_vm0, %v624_v32 }
 0x7a9   :  { %v654_v43 = vpop.f32.mrf.mxu0 }
 0x7aa   :  { %v655_v44 = vadd.f32 %v1679_v42, %v654_v43 }
 0x7ac   :  { %v662_v45 = vmul.f32 0.044715, %v655_v44  ;;  %v660_v55 = vmul.f32 0.5, %v655_v44 }
 0x7ae   :  { %v664_v46 = vmul.f32 %v662_v45, %v655_v44 }
 0x7b0   :  { %v666_v47 = vmul.f32 %v664_v46, %v655_v44 }
 0x7b2   :  { %v668_v48 = vadd.f32 %v666_v47, %v655_v44  ;;  %v1606_v44 = vld [vmem:[%s2390_s2 + $0xe8] sm:$0xff]  ;;  %v1605_v47 = vld [vmem:[%s2390_s2 + $0xe0] sm:$0xff] }
 0x7b4   :  { %v670_v49 = vmul.f32 0.7978846, %v668_v48 }
 0x7b6   :  { %1724 = vtanh.f32 %v670_v49 }
 0x7b7   :  { %v657_v50 = vpop.f32.mrf.mxu0 }
 0x7b8   :  { %v658_v51 = vadd.f32 %v1679_v42, %v657_v50 }
 0x7ba   :  { %v663_v52 = vmul.f32 0.044715, %v658_v51  ;;  %v661_v62 = vmul.f32 0.5, %v658_v51 }
 0x7bc   :  { %v1725_v53 = vpop.eup %1724  ;;  %v665_v54 = vmul.f32 %v663_v52, %v658_v51 }
 0x7bd   :  { %v674_v56 = vadd.f32 1.0, %v1725_v53  ;;  %v1682_v53 = vld [vmem:[%s2394_s6 + $0xe] ss:$0 sm:$0xff] }
 0x7be   :  { %v667_v57 = vmul.f32 %v665_v54, %v658_v51 }
 0x7bf   :  { %v676_v58 = vmul.f32 %v674_v56, %v660_v55 }
 0x7c0   :  { %v669_v59 = vadd.f32 %v667_v57, %v658_v51  ;;  %v1681_v51 = vld [vmem:[%s2394_s6 + $0xd] ss:$0 sm:$0xff] }
 0x7c1   :  { %1579 = vmatmul.msk.f32.vlgmr.msrb.gmra.mxu1 %vm688_vm1, %v676_v58 }
 0x7c2   :  { %v671_v60 = vmul.f32 0.7978846, %v669_v59 }
 0x7c4   :  { %1726 = vtanh.f32 %v671_v60 }
 0x7ca   :  { %v1727_v61 = vpop.eup %1726 }
 0x7cb   :  { %v675_v0 = vadd.f32 1.0, %v1727_v61 }
 0x7cd   :  { %v677_v63 = vmul.f32 %v675_v0, %v661_v62 }
 0x7cf   :  { %1580 = vmatmul.msk.f32.gmra.mxu1 %vm688_vm1, %v677_v63 }
 0x83e   :  { %v712_v2 = vpop.f32.mrf.mxu1 }
 0x83f   :  { %v713_v3 = vadd.f32 %v1680_v1, %v712_v2 }
 0x841   :  { %v718_v4 = vadd.f32 %v713_v3, %v623_v23  ;;  %v1596_v23 = vld [vmem:[%s2390_s2 + $0x158] sm:$0xff]  ;;  %v1685_v3 = vld [vmem:[%s2394_s6 + $0x11] ss:$0 sm:$0xff] }
 0x842   :  { %857 = vmatpush.msrb.mxu0 %v1596_v23 }
 0x843   :  { %v722_v5 = vsel %vm31_vm0, %v718_v4, 0.0 }
 0x844   :  { %723 = vadd.xlane.f32.xlu2 %v722_v5  ;;  %858 = vmatpush.msrb.mxu0 %v1595_v26 }
 0x846   :  { %859 = vmatpush.msrb.mxu0 %v1594_v30  ;;  %v1687_v30 = vld [vmem:[%s2394_s6 + $0x12] ss:$0 sm:$0xff] }
 0x848   :  { %860 = vmatpush.msrb.mxu0 %v1593_v34 }
 0x84a   :  { %1007 = vmatpush.msra.mxu0 %v1608_v40 }
 0x84c   :  { %v715_v6 = vpop.f32.mrf.mxu1  ;;  %1008 = vmatpush.msra.mxu0 %v1607_v41 }
 0x84d   :  { %v716_v7 = vadd.f32 %v1680_v1, %v715_v6  ;;  %v1684_v6 = vld [vmem:[%s2394_s6 + $0xf] ss:$0 sm:$0xff] }
 0x84e   :  { %1009 = vmatpush.msra.mxu0 %v1606_v44  ;;  %v1620_v44 = vld [vmem:[%s2390_s2 + $0x178] sm:$0xff] }
 0x84f   :  { %v719_v8 = vadd.f32 %v716_v7, %v624_v32  ;;  %v1587_v32 = vld [vmem:[%s2390_s2 + $0x100] sm:$0xff] }
 0x850   :  { %830 = vmatpush.msrb.mxu3 %v1587_v32  ;;  %1010 = vmatpush.msra.mxu0 %v1605_v47  ;;  %v1617_v47 = vld [vmem:[%s2390_s2 + $0x160] sm:$0xff] }
 0x851   :  { %v725_v9 = vsel %vm31_vm0, %v719_v8, 0.0 }
 0x852   :  { %726 = vadd.xlane.f32.xlu1 %v725_v9 }
 0x8b7   :  { %v724_v11 = vpop.xlane.xlu2 %723 }
 0x8b8   :  { %v728_v12 = vmul.f32 %v724_v11, %v1839_v10 }
 0x8ba   :  { %v730_v13 = vsub.f32 %v718_v4, %v728_v12  ;;  %v1683_v4 = vld [vmem:[%s2394_s6 + $0x13] ss:$0 sm:$0xff] }
 0x8bc   :  { %v732_v14 = vmul.f32 %v730_v13, %v730_v13 }
 0x8be   :  { %v734_v15 = vsel %vm31_vm0, %v732_v14, 0.0 }
 0x8bf   :  { %735 = vadd.xlane.f32.xlu2 %v734_v15 }
 0x8c5   :  { %v727_v16 = vpop.xlane.xlu1 %726 }
 0x8c6   :  { %v729_v17 = vmul.f32 %v727_v16, %v1839_v10 }
 0x8c8   :  { %v2100_v18 = vsub.f32 %v719_v8, %v729_v17 }
 0x8ca   :  { %v733_v19 = vmul.f32 %v2100_v18, %v2100_v18 }
 0x8cc   :  { %v737_v20 = vsel %vm31_vm0, %v733_v19, 0.0 }
 0x8cd   :  { %738 = vadd.xlane.f32.xlu2 %v737_v20  ;;  %v1613_v20 = vld [vmem:[%s2390_s2 + $0x130] sm:$0xff] }
 0x932   :  { %v736_v35 = vpop.xlane.xlu2 %735 }
 0x933   :  { %v740_v36 = vmul.f32 %v736_v35, %v1839_v10 }
 0x935   :  { %v742_v37 = vadd.f32 1e-12, %v740_v36 }
 0x937   :  { %1728 = vrsqrt.f32 %v742_v37  ;;  %vm750_vm3 = vweird.f32 %v742_v37 }
 0x93d   :  { %v1729_v38 = vpop.eup %1728 }
 0x93e   :  { %v745_v39 = vmul.f32 %v1729_v38, %v742_v37  ;;  %vm751_vm2 = vweird.f32 %v1729_v38 }
 0x93f   :  { %vm752_vm4 = vmor %vm750_vm3, %vm751_vm2 }
 0x940   :  { %v746_v42 = vmul.f32 %v1729_v38, %v745_v39  ;;  %v739_v43 = vpop.xlane.xlu2 %738 }
 0x941   :  { %v741_v45 = vmul.f32 %v739_v43, %v1839_v10 }
 0x942   :  { %v747_v46 = vmul.f32 0.5, %v746_v42 }
 0x943   :  { %v743_v48 = vadd.f32 1e-12, %v741_v45  ;;  %v1619_v45 = vld [vmem:[%s2390_s2 + $0x170] sm:$0xff] }
 0x944   :  { %v748_v49 = vsub.f32 1.5, %v747_v46  ;;  %v1618_v46 = vld [vmem:[%s2390_s2 + $0x168] sm:$0xff] }
 0x945   :  { %1730 = vrsqrt.f32 %v743_v48  ;;  %vm760_vm6 = vweird.f32 %v743_v48 }
 0x946   :  { %v749_v50 = vmul.f32 %v1729_v38, %v748_v49 }
 0x948   :  { %v753_v52 = vsel %vm752_vm4, %v1729_v38, %v749_v50 }
 0x949   :  { %v764_v54 = vmul.f32 %v753_v52, %v730_v13 }
 0x94b   :  { %v1731_v55 = vpop.eup %1730  ;;  %v767_v56 = vmul.f32 %v1681_v51, %v764_v54 }
 0x94c   :  { %v755_v57 = vmul.f32 %v1731_v55, %v743_v48  ;;  %vm761_vm5 = vweird.f32 %v1731_v55 }
 0x94d   :  { %v2161_v58 = vadd.f32 %v1682_v53, %v767_v56  ;;  %vm762_vm7 = vmor %vm760_vm6, %vm761_vm5  ;;  %vm1449_vm5 = vcmask 1040384   ;;  %vm1512_vm6 = vcmask 9216  }
 0x94e   :  { %v756_v59 = vmul.f32 %v1731_v55, %v755_v57 }
 0x94f   :  { %1585 = vmatmul.msk.f32.vlgmr.msra.gmra.mxu2 %vm31_vm0, %v2161_v58  ;;  %1591 = vmatmul.msk.f32.vlgmr.msrb.gmra.mxu3 %vm31_vm0, %v2161_v58 }
 0x950   :  { %v757_v60 = vmul.f32 0.5, %v756_v59  ;;  %1597 = vmatmul.msk.f32.vlgmr.msrb.gmra.mxu0 %vm31_vm0, %v2161_v58 }
 0x952   :  { %v758_v61 = vsub.f32 1.5, %v757_v60 }
 0x954   :  { %v759_v62 = vmul.f32 %v1731_v55, %v758_v61 }
 0x956   :  { %v763_v0 = vsel %vm762_vm7, %v1731_v55, %v759_v62  ;;  %v1686_v55 = vld [vmem:[%s2394_s6 + $0x10] ss:$0 sm:$0xff] }
 0x957   :  { %v765_v63 = vmul.f32 %v763_v0, %v2100_v18  ;;  %v1614_v18 = vld [vmem:[%s2390_s2 + $0x138] sm:$0xff] }
 0x959   :  { %v768_v1 = vmul.f32 %v1681_v51, %v765_v63 }
 0x95b   :  { %v2170_v2 = vadd.f32 %v1682_v53, %v768_v1 }
 0x95d   :  { %1586 = vmatmul.msk.f32.gmra.mxu2 %vm31_vm0, %v2170_v2  ;;  %1592 = vmatmul.msk.f32.gmra.mxu3 %vm31_vm0, %v2170_v2 }
 0x95e   :  { %1598 = vmatmul.msk.f32.gmra.mxu0 %vm31_vm0, %v2170_v2 }
 0x966   :  { %1609 = vmatmul.msk.f32.vlgmr.msra.gmra.mxu0 %vm31_vm0, %v2161_v58 }
 0x96e   :  { %1610 = vmatmul.msk.f32.gmra.mxu0 %vm31_vm0, %v2170_v2 }
 0x9cd   :  { %v862_v5 = vpop.f32.mrf.mxu0 }
 0x9ce   :  { %v863_v11 = vadd.f32 %v1683_v4, %v862_v5 }
 0x9d2   :  { %v832_v7 = vpop.f32.mrf.mxu3  ;;  %v802_v8 = vpop.f32.mrf.mxu2 }
 0x9d3   :  { %v833_v9 = vadd.f32 %v1685_v3, %v832_v7  ;;  %v803_v12 = vadd.f32 %v1684_v6, %v802_v8 }
 0x9d5   :  { %1599 = vmatpush.xpose.msk.msrb.mxu2 %vm194_vm8, %v833_v9 }
 0x9d8   :  { %1600 = vmatmul.msk.f32.vlgmr.msrb.gmra.mxu2 %vm194_vm8, %v803_v12 }
 0x9d9   :  { %960 = vmatpush.msra.mxu2 %v863_v11 }
 0x9db   :  { %v865_v13 = vpop.f32.mrf.mxu0  ;;  %1067 = vmatpush.msrb.mxu2 %v1620_v44 }
 0x9dc   :  { %v866_v14 = vadd.f32 %v1683_v4, %v865_v13  ;;  %v1688_v4 = vld [vmem:[%s2394_s6 + $0x14] ss:$0 sm:$0xff] }
 0x9dd   :  { %1068 = vmatpush.msrb.mxu2 %v1619_v45 }
 0x9de   :  { %983 = vmatpush.msra.mxu3 %v866_v14 }
 0x9df   :  { %1069 = vmatpush.msrb.mxu2 %v1618_v46 }
 0x9e0   :  { %v835_v15 = vpop.f32.mrf.mxu3  ;;  %v805_v16 = vpop.f32.mrf.mxu2 }
 0x9e1   :  { %v836_v17 = vadd.f32 %v1685_v3, %v835_v15  ;;  %v806_v19 = vadd.f32 %v1684_v6, %v805_v16  ;;  %1070 = vmatpush.msrb.mxu2 %v1617_v47 }
 0x9e3   :  { %1601 = vmatpush.xpose.msk.msra.mxu1 %vm194_vm8, %v836_v17  ;;  %v1012_v54 = vpop.f32.mrf.mxu0 }
 0x9e4   :  { %v1013_v57 = vadd.f32 %v1686_v55, %v1012_v54 }
 0x9e6   :  { %1602 = vmatmul.msk.f32.vlgmr.msra.gmra.mxu1 %vm194_vm8, %v806_v19 }
 0x9e7   :  { %1037 = vmatpush.msrb.mxu1 %v1614_v18 }
 0x9e9   :  { %1038 = vmatpush.msrb.mxu1 %v1613_v20 }
 0x9eb   :  { %1039 = vmatpush.msrb.mxu1 %v1612_v21  ;;  %v1015_v60 = vpop.f32.mrf.mxu0 }
 0x9ec   :  { %v1016_v61 = vadd.f32 %v1686_v55, %v1015_v60  ;;  %v1635_v60 = vld [vmem:[%s2392_s4 + $0x20] sm:$0xff] }
 0x9ed   :  { %1040 = vmatpush.msrb.mxu1 %v1611_v22 }
 0x9ee   :  { %1615 = vmatmul.msk.f32.vlgmr.msrb.gmra.mxu1 %vm31_vm0, %v2161_v58 }
 0x9f6   :  { %1616 = vmatmul.msk.f32.gmra.mxu1 %vm31_vm0, %v2170_v2 }
 0xa5b   :  { %v891_v23 = vpop.f32.mrf.mxu2 }
 0xa5c   :  { %v892_v24 = vadd.f32 %v891_v23, %v1967_v28 }
 0xa5e   :  { %v920_v25 = vsel %vm247_vm9, %v892_v24, -inf }
 0xa5f   :  { %921 = vmax.xlane.f32.xlu0 %v920_v25 }
 0xa63   :  { %v917_v26 = vpop.f32.mrf.mxu1 }
 0xa64   :  { %v918_v27 = vadd.f32 %v917_v26, %v1971_v33 }
 0xa66   :  { %v923_v29 = vsel %vm247_vm9, %v918_v27, -inf }
 0xa67   :  { %924 = vmax.xlane.f32.xlu2 %v923_v29 }
 0xa6b   :  { %v1042_v31 = vpop.f32.mrf.mxu1 }
 0xa6c   :  { %v1043_v32 = vadd.f32 %v1687_v30, %v1042_v31  ;;  %v1631_v31 = vld [vmem:[%s2391_s3 + $0x30] sm:$0xff] }
 0xa6e   :  { %1623 = vmatpush.xpose.msk.msrb.mxu3 %vm194_vm8, %v1043_v32  ;;  %v1630_v32 = vld [vmem:[%s2391_s3 + $0x28] sm:$0xff] }
 0xa73   :  { %v1045_v49 = vpop.f32.mrf.mxu1 }
 0xa74   :  { %v1046_v53 = vadd.f32 %v1687_v30, %v1045_v49  ;;  %v1632_v30 = vld [vmem:[%s2391_s3 + $0x38] sm:$0xff] }
 0xad2   :  { %v922_v34 = vpop.xlane.xlu0 %921 }
 0xad3   :  { %v926_v37 = vsub.f32 %v892_v24, %v922_v34  ;;  %v1629_v34 = vld [vmem:[%s2391_s3 + $0x20] sm:$0xff] }
 0xad5   :  { %v928_v39 = vmul.f32 1.442695, %v926_v37 }
 0xada   :  { %v925_v35 = vpop.xlane.xlu2 %924 }
 0xadb   :  { %v927_v36 = vsub.f32 %v918_v27, %v925_v35 }
 0xadd   :  { %v930_v38 = vmul.f32 1.442695, %v927_v36 }
 0xadf   :  { %1732 = vpow2.f32 %v930_v38 }
 0xae0   :  { %1734 = vpow2.f32 %v928_v39  ;;  %v1689_v39 = vld [vmem:[%s2394_s6 + $0x15] ss:$0 sm:$0xff] }
 0xae5   :  { %v1733_v40 = vpop.eup %1732 }
 0xae6   :  { %v935_v41 = vsel %vm247_vm9, %v1733_v40, 0.0  ;;  %v1735_v42 = vpop.eup %1734 }
 0xae7   :  { %936 = vadd.xlane.f32.xlu2 %v935_v41  ;;  %v932_v43 = vsel %vm247_vm9, %v1735_v42, 0.0 }
 0xaef   :  { %933 = vadd.xlane.f32.xlu2 %v932_v43 }
 0xb5a   :  { %v937_v48 = vpop.xlane.xlu2 %936 }
 0xb5b   :  { %1736 = vrcp.f32 %v937_v48 }
 0xb61   :  { %v1737_v50 = vpop.eup %1736 }
 0xb62   :  { %v941_v51 = vmul.f32 %v1737_v50, %v1733_v40  ;;  %v934_v52 = vpop.xlane.xlu2 %933 }
 0xb63   :  { %1738 = vrcp.f32 %v934_v52 }
 0xb64   :  { %1604 = vmatmul.msk.f32.vlgmr.msra.gmra.mxu3 %vm247_vm9, %v941_v51 }
 0xb65   :  { %1625 = vmatpush.xpose.msk.msra.mxu3 %vm194_vm8, %v1046_v53 }
 0xb69   :  { %v1739_v56 = vpop.eup %1738 }
 0xb6a   :  { %v940_v59 = vmul.f32 %v1739_v56, %v1735_v42 }
 0xb6c   :  { %1603 = vmatmul.msk.f32.vlgmr.msra.gmra.mxu2 %vm247_vm9, %v940_v59  ;;  %1624 = vmatmul.msk.f32.vlgmr.msrb.gmra.mxu3 %vm194_vm8, %v1013_v57  ;;  %v1637_v57 = vld [vmem:[%s2392_s4 + $0x30] sm:$0xff]  ;;  %v1636_v59 = vld [vmem:[%s2392_s4 + $0x28] sm:$0xff] }
 0xb6d   :  { %1233 = vmatpush.msra.mxu2 %v1632_v30  ;;  %v1644_v30 = vld [vmem:[%s2393_s5 + $0x58] sm:$0xff] }
 0xb6f   :  { %1234 = vmatpush.msra.mxu2 %v1631_v31  ;;  %v1643_v31 = vld [vmem:[%s2393_s5 + $0x50] sm:$0xff] }
 0xb71   :  { %1235 = vmatpush.msra.mxu2 %v1630_v32  ;;  %v1642_v32 = vld [vmem:[%s2393_s5 + $0x48] sm:$0xff] }
 0xb73   :  { %1236 = vmatpush.msra.mxu2 %v1629_v34  ;;  %v1641_v34 = vld [vmem:[%s2393_s5 + $0x40] sm:$0xff] }
 0xb74   :  { %1621 = vmatmul.msk.f32.vlgmr.msrb.gmra.mxu2 %vm31_vm0, %v2161_v58  ;;  %1626 = vmatmul.msk.f32.vlgmr.msra.gmra.mxu3 %vm194_vm8, %v1016_v61 }
 0xb7c   :  { %1622 = vmatmul.msk.f32.gmra.mxu2 %vm31_vm0, %v2170_v2 }
 0xbe7   :  { %v985_v62 = vpop.f32.mrf.mxu3 }
 0xbef   :  { %v962_v0 = vpop.f32.mrf.mxu2  ;;  %v1101_v63 = vpop.f32.mrf.mxu3 }
 0xbf0   :  { %v1102_v1 = vadd.f32 %v1101_v63, %v1967_v28 }
 0xbf2   :  { %v1130_v3 = vsel %vm247_vm9, %v1102_v1, -inf }
 0xbf3   :  { %1131 = vmax.xlane.f32.xlu1 %v1130_v3 }
 0xbf7   :  { %v1072_v5 = vpop.f32.mrf.mxu2  ;;  %v1127_v6 = vpop.f32.mrf.mxu3 }
 0xbf8   :  { %v1073_v7 = vadd.f32 %v1688_v4, %v1072_v5  ;;  %v1128_v8 = vadd.f32 %v1127_v6, %v1971_v33 }
 0xbfa   :  { %1170 = vmatpush.msrb.mxu0 %v1073_v7  ;;  %v1133_v9 = vsel %vm247_vm9, %v1128_v8, -inf }
 0xbfb   :  { %1134 = vmax.xlane.f32.xlu0 %v1133_v9 }
 0xbff   :  { %v1075_v11 = vpop.f32.mrf.mxu2 }
 0xc00   :  { %v1076_v12 = vadd.f32 %v1688_v4, %v1075_v11 }
 0xc02   :  { %1193 = vmatpush.msra.mxu1 %v1076_v12 }
 0xc66   :  { %v1132_v28 = vpop.xlane.xlu1 %1131 }
 0xc67   :  { %v1136_v13 = vsub.f32 %v1102_v1, %v1132_v28  ;;  %v1690_v28 = vld [vmem:[%s2394_s6 + $0x16] ss:$0 sm:$0xff] }
 0xc69   :  { %v1138_v14 = vmul.f32 1.442695, %v1136_v13 }
 0xc6b   :  { %1740 = vpow2.f32 %v1138_v14 }
 0xc6e   :  { %v1135_v15 = vpop.xlane.xlu0 %1134 }
 0xc6f   :  { %v1137_v16 = vsub.f32 %v1128_v8, %v1135_v15 }
 0xc71   :  { %v1741_v17 = vpop.eup %1740  ;;  %v1140_v18 = vmul.f32 1.442695, %v1137_v16  ;;  %v1691_v16 = vld [vmem:[%s2394_s6 + $0x17] ss:$0 sm:$0xff] }
 0xc72   :  { %v1142_v19 = vsel %vm247_vm9, %v1741_v17, 0.0 }
 0xc73   :  { %1742 = vpow2.f32 %v1140_v18  ;;  %1143 = vadd.xlane.f32.xlu2 %v1142_v19 }
 0xc79   :  { %v1743_v33 = vpop.eup %1742 }
 0xc7a   :  { %v1145_v20 = vsel %vm247_vm9, %v1743_v33, 0.0 }
 0xc7b   :  { %1146 = vadd.xlane.f32.xlu1 %v1145_v20 }
 0xce6   :  { %v1144_v21 = vpop.xlane.xlu2 %1143 }
 0xce7   :  { %1744 = vrcp.f32 %v1144_v21 }
 0xced   :  { %v1745_v22 = vpop.eup %1744 }
 0xcee   :  { %v1150_v23 = vmul.f32 %v1745_v22, %v1741_v17  ;;  %v1147_v24 = vpop.xlane.xlu1 %1146 }
 0xcef   :  { %1746 = vrcp.f32 %v1147_v24 }
 0xcf0   :  { %1627 = vmatmul.msk.f32.vlgmr.msrb.gmra.mxu0 %vm247_vm9, %v1150_v23 }
 0xcf5   :  { %v1747_v25 = vpop.eup %1746 }
 0xcf6   :  { %v1151_v26 = vmul.f32 %v1747_v25, %v1743_v33  ;;  %v1648_v25 = vld [vmem:[%s2393_s5 + $0x78] sm:$0xff] }
 0xcf7   :  { %1377 = vmatpush.msra.mxu0 %v1648_v25 }
 0xcf8   :  { %1628 = vmatmul.msk.f32.vlgmr.msra.gmra.mxu1 %vm247_vm9, %v1151_v26  ;;  %v1647_v26 = vld [vmem:[%s2393_s5 + $0x70] sm:$0xff] }
 0xcf9   :  { %1378 = vmatpush.msra.mxu0 %v1647_v26 }
 0xd6d   :  { %v1172_v27 = vpop.f32.mrf.mxu0 }
 0xd6e   :  { %1200 = vrot.lane.b32.xlu0 %v1172_v27, %s1789_s27  ;;  %v1646_v27 = vld [vmem:[%s2393_s5 + $0x68] sm:$0xff] }
 0xd6f   :  { %1379 = vmatpush.msra.mxu0 %v1646_v27 }
 0xd75   :  { %v1195_v29 = vpop.f32.mrf.mxu1 }
 0xd76   :  { %1202 = vrot.lane.b32.xlu2 %v1195_v29, %s1789_s27  ;;  %v1645_v29 = vld [vmem:[%s2393_s5 + $0x60] sm:$0xff] }
 0xd77   :  { %1380 = vmatpush.msra.mxu0 %v1645_v29 }
 0xd79   :  { %1381 = vmatpush.msra.mxu0 %v1644_v30 }
 0xd7b   :  { %1382 = vmatpush.msra.mxu0 %v1643_v31 }
 0xd7d   :  { %1383 = vmatpush.msra.mxu0 %v1642_v32 }
 0xd7f   :  { %1384 = vmatpush.msra.mxu0 %v1641_v34  ;;  %v1694_v34 = vld [vmem:[%s2394_s6 + $0x1a] ss:$0 sm:$0xff] }
 0xdd0   :  { %v1203_v37 = vpop.permute.xlu2 %1202 }
 0xdd1   :  { %v1207_v38 = vsel %vm194_vm8, %v985_v62, %v1203_v37 }
 0xde0   :  { %v1201_v35 = vpop.permute.xlu0 %1200 }
 0xde1   :  { %v1206_v36 = vsel %vm194_vm8, %v962_v0, %v1201_v35  ;;  %v1692_v35 = vld [vmem:[%s2394_s6 + $0x18] ss:$0 sm:$0xff] }
 0xde2   :  { %1633 = vmatmul.msk.f32.vlgmr.msra.gmra.mxu2 %vm31_vm0, %v1206_v36 }
 0xdea   :  { %1634 = vmatmul.msk.f32.gmra.mxu2 %vm31_vm0, %v1207_v38 }
 0xe65   :  { %v1238_v40 = vpop.f32.mrf.mxu2 }
 0xe66   :  { %v1239_v41 = vadd.f32 %v1689_v39, %v1238_v40 }
 0xe68   :  { %v1244_v42 = vadd.f32 %v1239_v41, %v2161_v58 }
 0xe6a   :  { %v1248_v43 = vsel %vm31_vm0, %v1244_v42, 0.0 }
 0xe6b   :  { %1249 = vadd.xlane.f32.xlu1 %v1248_v43 }
 0xe6d   :  { %v1241_v44 = vpop.f32.mrf.mxu2 }
 0xe6e   :  { %v1242_v45 = vadd.f32 %v1689_v39, %v1241_v44 }
 0xe70   :  { %v1245_v46 = vadd.f32 %v1242_v45, %v2170_v2  ;;  %v1638_v2 = vld [vmem:[%s2392_s4 + $0x38] sm:$0xff] }
 0xe71   :  { %1323 = vmatpush.msrb.mxu3 %v1638_v2  ;;  %v1693_v2 = vld [vmem:[%s2394_s6 + $0x19] ss:$0 sm:$0xff] }
 0xe72   :  { %v1251_v47 = vsel %vm31_vm0, %v1245_v46, 0.0 }
 0xe73   :  { %1252 = vadd.xlane.f32.xlu1 %v1251_v47  ;;  %1324 = vmatpush.msrb.mxu3 %v1637_v57 }
 0xe75   :  { %1325 = vmatpush.msrb.mxu3 %v1636_v59 }
 0xe77   :  { %1326 = vmatpush.msrb.mxu3 %v1635_v60 }
 0xede   :  { %v1250_v48 = vpop.xlane.xlu1 %1249 }
 0xedf   :  { %v1254_v49 = vmul.f32 %v1250_v48, %v1839_v10 }
 0xee1   :  { %v1256_v50 = vsub.f32 %v1244_v42, %v1254_v49 }
 0xee3   :  { %v1258_v51 = vmul.f32 %v1256_v50, %v1256_v50 }
 0xee5   :  { %v1260_v52 = vsel %vm31_vm0, %v1258_v51, 0.0 }
 0xee6   :  { %1261 = vadd.xlane.f32.xlu0 %v1260_v52  ;;  %v1253_v53 = vpop.xlane.xlu1 %1252 }
 0xee7   :  { %v1255_v58 = vmul.f32 %v1253_v53, %v1839_v10 }
 0xee9   :  { %v1257_v54 = vsub.f32 %v1245_v46, %v1255_v58 }
 0xeeb   :  { %v1259_v55 = vmul.f32 %v1257_v54, %v1257_v54 }
 0xeed   :  { %v1263_v56 = vsel %vm31_vm0, %v1259_v55, 0.0 }
 0xeee   :  { %1264 = vadd.xlane.f32.xlu1 %v1263_v56 }
 0xf59   :  { %v1262_v61 = vpop.xlane.xlu0 %1261 }
 0xf5a   :  { %v1266_v62 = vmul.f32 %v1262_v61, %v1839_v10 }
 0xf5c   :  { %v1268_v0 = vadd.f32 1e-12, %v1266_v62 }
 0xf5e   :  { %1748 = vrsqrt.f32 %v1268_v0  ;;  %vm1276_vm9 = vweird.f32 %v1268_v0 }
 0xf61   :  { %v1265_v63 = vpop.xlane.xlu1 %1264 }
 0xf62   :  { %v1267_v1 = vmul.f32 %v1265_v63, %v1839_v10 }
 0xf64   :  { %v1749_v3 = vpop.eup %1748  ;;  %v1269_v4 = vadd.f32 1e-12, %v1267_v1 }
 0xf65   :  { %v1271_v5 = vmul.f32 %v1749_v3, %v1268_v0  ;;  %vm1277_vm8 = vweird.f32 %v1749_v3 }
 0xf66   :  { %1750 = vrsqrt.f32 %v1269_v4  ;;  %vm1278_vm10 = vmor %vm1276_vm9, %vm1277_vm8  ;;  %vm1286_vm12 = vweird.f32 %v1269_v4 }
 0xf67   :  { %v1272_v6 = vmul.f32 %v1749_v3, %v1271_v5 }
 0xf69   :  { %v1273_v7 = vmul.f32 0.5, %v1272_v6 }
 0xf6b   :  { %v1274_v8 = vsub.f32 1.5, %v1273_v7 }
 0xf6c   :  { %v1751_v9 = vpop.eup %1750 }
 0xf6d   :  { %v1275_v11 = vmul.f32 %v1749_v3, %v1274_v8  ;;  %v1281_v12 = vmul.f32 %v1751_v9, %v1269_v4  ;;  %vm1287_vm11 = vweird.f32 %v1751_v9 }
 0xf6e   :  { %vm1288_vm13 = vmor %vm1286_vm12, %vm1287_vm11 }
 0xf6f   :  { %v1279_v13 = vsel %vm1278_vm10, %v1749_v3, %v1275_v11  ;;  %v1282_v14 = vmul.f32 %v1751_v9, %v1281_v12 }
 0xf70   :  { %v1290_v15 = vmul.f32 %v1279_v13, %v1256_v50  ;;  %v1654_v13 = vld [vmem:[%s2391_s3 + $0x58] sm:$0xff] }
 0xf71   :  { %v1283_v17 = vmul.f32 0.5, %v1282_v14  ;;  %1473 = vmatpush.msrb.mxu1 %v1654_v13 }
 0xf72   :  { %v1293_v18 = vmul.f32 %v1690_v28, %v1290_v15 }
 0xf73   :  { %v1284_v19 = vsub.f32 1.5, %v1283_v17  ;;  %v1652_v17 = vld [vmem:[%s2391_s3 + $0x48] sm:$0xff] }
 0xf74   :  { %v1296_v33 = vadd.f32 %v1691_v16, %v1293_v18 }
 0xf75   :  { %v1285_v20 = vmul.f32 %v1751_v9, %v1284_v19  ;;  %v1651_v19 = vld [vmem:[%s2391_s3 + $0x40] sm:$0xff] }
 0xf76   :  { %1639 = vmatmul.msk.f32.vlgmr.msrb.gmra.mxu3 %vm31_vm0, %v1296_v33 }
 0xf77   :  { %v1289_v21 = vsel %vm1288_vm13, %v1751_v9, %v1285_v20 }
 0xf78   :  { %v1291_v22 = vmul.f32 %v1289_v21, %v1257_v54 }
 0xf7a   :  { %v1294_v23 = vmul.f32 %v1690_v28, %v1291_v22 }
 0xf7c   :  { %v1297_v24 = vadd.f32 %v1691_v16, %v1294_v23  ;;  %v1653_v16 = vld [vmem:[%s2391_s3 + $0x50] sm:$0xff] }
 0xf7d   :  { %1474 = vmatpush.msrb.mxu1 %v1653_v16 }
 0xf7e   :  { %1640 = vmatmul.msk.f32.gmra.mxu3 %vm31_vm0, %v1297_v24 }
 0xf7f   :  { %1475 = vmatpush.msrb.mxu1 %v1652_v17 }
 0xf81   :  { %1476 = vmatpush.msrb.mxu1 %v1651_v19 }
 0xff9   :  { %v1328_v36 = vpop.f32.mrf.mxu3 }
 0xffa   :  { %v1329_v37 = vadd.f32 %v1692_v35, %v1328_v36 }
 0xffc   :  { %v1336_v38 = vmul.f32 0.044715, %v1329_v37  ;;  %v1334_v51 = vmul.f32 0.5, %v1329_v37 }
 0xffe   :  { %v1338_v39 = vmul.f32 %v1336_v38, %v1329_v37  ;;  %v1695_v38 = vld [vmem:[%s2394_s6 + $0x1b] ss:$0 sm:$0xff] }
0x1000   :  { %v1340_v40 = vmul.f32 %v1338_v39, %v1329_v37 }
0x1001   :  { %v1331_v41 = vpop.f32.mrf.mxu3 }
0x1002   :  { %v1342_v42 = vadd.f32 %v1340_v40, %v1329_v37  ;;  %v1332_v43 = vadd.f32 %v1692_v35, %v1331_v41 }
0x1004   :  { %v1344_v44 = vmul.f32 0.7978846, %v1342_v42  ;;  %v1337_v45 = vmul.f32 0.044715, %v1332_v43  ;;  %v1335_v54 = vmul.f32 0.5, %v1332_v43 }
0x1006   :  { %1752 = vtanh.f32 %v1344_v44  ;;  %v1339_v46 = vmul.f32 %v1337_v45, %v1332_v43 }
0x1008   :  { %v1341_v47 = vmul.f32 %v1339_v46, %v1332_v43 }
0x100a   :  { %v1343_v48 = vadd.f32 %v1341_v47, %v1332_v43  ;;  %v1659_v47 = vld [vmem:[%s2391_s3 + $0x78] sm:$0xff] }
0x100b   :  { %1504 = vmatpush.msra.mxu1 %v1659_v47 }
0x100c   :  { %v1753_v49 = vpop.eup %1752  ;;  %v1345_v50 = vmul.f32 0.7978846, %v1343_v48  ;;  %v1658_v48 = vld [vmem:[%s2391_s3 + $0x70] sm:$0xff] }
0x100d   :  { %v1348_v52 = vadd.f32 1.0, %v1753_v49  ;;  %v1657_v49 = vld [vmem:[%s2391_s3 + $0x68] sm:$0xff]  ;;  %1505 = vmatpush.msra.mxu1 %v1658_v48 }
0x100e   :  { %1754 = vtanh.f32 %v1345_v50  ;;  %v1656_v50 = vld [vmem:[%s2391_s3 + $0x60] sm:$0xff] }
0x100f   :  { %v1350_v53 = vmul.f32 %v1348_v52, %v1334_v51  ;;  %1506 = vmatpush.msra.mxu1 %v1657_v49  ;;  %v1696_v51 = vld [vmem:[%s2394_s6 + $0x1c] ss:$0 sm:$0xff] }
0x1011   :  { %1649 = vmatmul.msk.f32.vlgmr.msra.gmra.mxu0 %vm688_vm1, %v1350_v53  ;;  %1507 = vmatpush.msra.mxu1 %v1656_v50 }
0x1014   :  { %v1755_v58 = vpop.eup %1754 }
0x1015   :  { %v1349_v55 = vadd.f32 1.0, %v1755_v58 }
0x1017   :  { %v1351_v56 = vmul.f32 %v1349_v55, %v1335_v54  ;;  %v1697_v54 = vld [vmem:[%s2394_s6 + $0x1d] ss:$0 sm:$0xff] }
0x1019   :  { %1650 = vmatmul.msk.f32.gmra.mxu0 %vm688_vm1, %v1351_v56 }
0x108e   :  { %v1386_v57 = vpop.f32.mrf.mxu0 }
0x108f   :  { %v1387_v59 = vadd.f32 %v1693_v2, %v1386_v57 }
0x1091   :  { %v1392_v60 = vadd.f32 %v1387_v59, %v1296_v33 }
0x1093   :  { %v1396_v61 = vsel %vm31_vm0, %v1392_v60, 0.0 }
0x1094   :  { %1397 = vadd.xlane.f32.xlu1 %v1396_v61 }
0x1096   :  { %v1389_v62 = vpop.f32.mrf.mxu0 }
0x1097   :  { %v1390_v0 = vadd.f32 %v1693_v2, %v1389_v62 }
0x1099   :  { %v1393_v63 = vadd.f32 %v1390_v0, %v1297_v24 }
0x109b   :  { %v1399_v1 = vsel %vm31_vm0, %v1393_v63, 0.0 }
0x109c   :  { %1400 = vadd.xlane.f32.xlu2 %v1399_v1 }
0x1107   :  { %v1398_v3 = vpop.xlane.xlu1 %1397 }
0x1108   :  { %v1402_v6 = vmul.f32 %v1398_v3, %v1839_v10 }
0x110a   :  { %v1404_v9 = vsub.f32 %v1392_v60, %v1402_v6 }
0x110c   :  { %v1406_v12 = vmul.f32 %v1404_v9, %v1404_v9 }
0x110e   :  { %v1408_v28 = vsel %vm31_vm0, %v1406_v12, 0.0 }
0x110f   :  { %v1401_v4 = vpop.xlane.xlu2 %1400 }
0x1110   :  { %v1403_v5 = vmul.f32 %v1401_v4, %v1839_v10 }
0x1112   :  { %v1405_v7 = vsub.f32 %v1393_v63, %v1403_v5 }
0x1114   :  { %v1407_v8 = vmul.f32 %v1405_v7, %v1405_v7 }
0x1116   :  { %v1411_v11 = vsel %vm31_vm0, %v1407_v8, 0.0 }
0x1117   :  { %1412 = vadd.xlane.f32.xlu1 %v1411_v11 }
0x111f   :  { %1409 = vadd.xlane.f32.xlu1 %v1408_v28 }
0x118a   :  { %v1413_v14 = vpop.xlane.xlu1 %1412 }
0x118b   :  { %v1415_v15 = vmul.f32 %v1413_v14, %v1839_v10 }
0x118d   :  { %v1417_v18 = vadd.f32 1e-12, %v1415_v15 }
0x118f   :  { %1756 = vrsqrt.f32 %v1417_v18  ;;  %vm1434_vm15 = vweird.f32 %v1417_v18 }
0x1192   :  { %v1410_v33 = vpop.xlane.xlu1 %1409 }
0x1193   :  { %v1414_v20 = vmul.f32 %v1410_v33, %v1839_v10 }
0x1195   :  { %v1757_v21 = vpop.eup %1756  ;;  %v1416_v22 = vadd.f32 1e-12, %v1414_v20 }
0x1196   :  { %v1429_v23 = vmul.f32 %v1757_v21, %v1417_v18  ;;  %vm1435_vm14 = vweird.f32 %v1757_v21 }
0x1197   :  { %1758 = vrsqrt.f32 %v1416_v22  ;;  %vm1436_vm1 = vmor %vm1434_vm15, %vm1435_vm14  ;;  %vm1424_vm3 = vweird.f32 %v1416_v22 }
0x1198   :  { %v1430_v24 = vmul.f32 %v1757_v21, %v1429_v23 }
0x119a   :  { %v1431_v25 = vmul.f32 0.5, %v1430_v24 }
0x119c   :  { %v1432_v26 = vsub.f32 1.5, %v1431_v25 }
0x119d   :  { %v1759_v27 = vpop.eup %1758 }
0x119e   :  { %v1433_v29 = vmul.f32 %v1757_v21, %v1432_v26  ;;  %v1419_v30 = vmul.f32 %v1759_v27, %v1416_v22  ;;  %vm1425_vm2 = vweird.f32 %v1759_v27 }
0x119f   :  { %vm1426_vm4 = vmor %vm1424_vm3, %vm1425_vm2 }
0x11a0   :  { %v1437_v31 = vsel %vm1436_vm1, %v1757_v21, %v1433_v29  ;;  %v1420_v32 = vmul.f32 %v1759_v27, %v1419_v30 }
0x11a1   :  { %v1439_v10 = vmul.f32 %v1437_v31, %v1405_v7 }
0x11a2   :  { %v1421_v35 = vmul.f32 0.5, %v1420_v32 }
0x11a3   :  { %v1442_v37 = vmul.f32 %v1694_v34, %v1439_v10 }
0x11a4   :  { %v1422_v36 = vsub.f32 1.5, %v1421_v35 }
0x11a5   :  { %v1445_v42 = vadd.f32 %v1695_v38, %v1442_v37 }
0x11a6   :  { %v1423_v39 = vmul.f32 %v1759_v27, %v1422_v36 }
0x11a7   :  { %v1447_v45 = vrot.slane %v1445_v42, 7 }
0x11a8   :  { %v1427_v40 = vsel %vm1426_vm4, %v1759_v27, %v1423_v39 }
0x11a9   :  { %v1438_v41 = vmul.f32 %v1427_v40, %v1404_v9 }
0x11ab   :  { %v1441_v43 = vmul.f32 %v1694_v34, %v1438_v41 }
0x11ad   :  { %v1444_v44 = vadd.f32 %v1695_v38, %v1441_v43 }
0x11af   :  { %v1450_v46 = vsel %vm1449_vm5, %v1444_v44, %v1447_v45 }
0x11b0   :  { %1655 = vmatmul.msk.f32.vlgmr.msrb.gmra.mxu1 %vm31_vm0, %v1450_v46 }
0x122d   :  { %v1478_v52 = vpop.f32.mrf.mxu1 }
0x122e   :  { %v1479_v53 = vadd.f32 %v1696_v51, %v1478_v52 }
0x1230   :  { %1760 = vtanh.f32 %v1479_v53 }
0x1236   :  { %v1761_v58 = vpop.eup %1760 }
0x1237   :  { %1660 = vmatmul.msk.f32.vlgmr.msra.gmra.mxu1 %vm31_vm0, %v1761_v58 }
0x12b4   :  { %v1509_v55 = vpop.f32.mrf.mxu1 }
0x12b5   :  { %v1510_v56 = vadd.f32 %v1697_v54, %v1509_v55 }
0x12b7   :  { %1513 = vst.msk [vmem:[#allocation2] sm:$0x3] %vm1512_vm6, %v1510_v56 }
0x12b8   :  { %1524 = dma.vmem_to_hbm [thread:$0]  %s1520_s17, 32, %s1522_s18, [#allocation3]  }
0x12b9   :  { %1786 = dma.done.wait [#allocation3], 32  }
0x12ba   :  { %1787 = vsyncadd [#allocation3], 4294967264 }
0x12bb   :  { %1529 = vsyncpa [#allocation3], 1 }

</bundles_post_ra>
